<compile_context>
chip_gen: v7x
topology: tpu7x:2x2x1
jax: 0.10.0
libtpu: 0.0.40
codegen_flags: <defaults>
</compile_context>

<pallas_src>
import jax
import jax.numpy as jnp
from jax import lax
from jax.experimental import pallas as pl
from jax.experimental.pallas import tpu as pltpu

C_IN = 100                       # Conv1d in_channels  (input_size)
C_PAD = 128                      # contraction dim padded to lane width
C_OUT = 128                      # Conv1d out_channels (out_size)
L = 128                          # sequence length (feature_num), fixed by MaxPool sizes
KSIZES = (3, 4, 5)
KMAX = max(KSIZES)
N_FEAT = len(KSIZES) * C_OUT     # 384
HALF = N_FEAT // 2               # 192
K_STACK = KMAX * C_PAD           # 640: stacked contraction dimension
BLOCK_B = 8                      # max batch elements per grid step (raise for large B;
                                 # per-step VMEM at bb=8 is ~8 MiB, well under limits)


def textcnn_kernel(x_ref, w_ref, b_ref, lout_ref, out_ref):
    # x_ref   : (bb*L, C_PAD) bf16   -- bb sequences stacked along rows (NLC, channel-padded)
    # w_ref   : (K_STACK, N_FEAT) bf16  -- fused per-tap weights stacked along K, cols permuted
    # b_ref   : (1, N_FEAT) f32         -- fused bias, columns permuted
    # lout_ref: (1, N_FEAT) int32       -- valid time length per (permuted) column
    # out_ref : (1, bb, HALF) f32       -- final pooled features (after MaxPool1d(2))
    bb = out_ref.shape[1]
    M = x_ref.shape[0]                     # bb * L
    x_bf = x_ref[...]                      # (M, C_PAD) bf16

    # Shifted copies of x: row t of copy j holds x[t+j].  Rolls are done in f32
    # (single upcast) to stay on the well-supported 32-bit sublane-rotate path.
    x_f32 = x_bf.astype(jnp.float32)
    shifted = [x_bf]
    for j in range(1, KMAX):
        shifted.append(pltpu.roll(x_f32, shift=M - j, axis=0).astype(jnp.bfloat16))
    x_cat = jnp.concatenate(shifted, axis=1)            # (M, K_STACK) bf16, lane concat

    # Fused convolution for all 3 branches and all taps: ONE bf16 MXU matmul, f32 acc.
    acc = jnp.dot(x_cat, w_ref[...], preferred_element_type=jnp.float32)   # (M, N_FEAT)

    # Row-validity mask per column (branch): t < L - k + 1.  Wrap-around / cross-sequence
    # rows either land in t >= l_out (masked) or multiply exactly-zero weight columns.
    t_idx = lax.broadcasted_iota(jnp.int32, (L, 1), 0)   # (L, 1)
    valid = t_idx < lout_ref[...]                        # (L, N_FEAT)

    # Per-sequence max over time (bias + ReLU applied after the max: monotone).
    acc3 = acc.reshape(bb, L, N_FEAT)                    # free view: 128-row split
    masked = jnp.where(valid[None, :, :], acc3, -jnp.inf)
    pooled = jnp.max(masked, axis=1)                     # (bb, N_FEAT)
    feat = jnp.maximum(pooled + b_ref[...], 0.0)         # bias + ReLU

    # Final MaxPool1d(2): thanks to the column permutation, pair (2c, 2c+1) of the
    # original feature order sits at columns (c, c+HALF).
    out_ref[0] = jnp.maximum(feat[:, :HALF], feat[:, HALF:])


def _prep_params(params):
    """Fuse the 3 conv branches into per-tap weights/bias, permute columns so the
    trailing MaxPool1d(2) becomes max(first half, second half), and stack the tap
    dimension into the contraction dimension (K = KMAX*C_PAD)."""
    w_full = jnp.zeros((KMAX, C_PAD, N_FEAT), jnp.float32)
    b_full = jnp.zeros((1, N_FEAT), jnp.float32)
    louts = []
    for bi, ((w, b), k) in enumerate(zip(params, KSIZES)):
        # w: (k, C_IN, C_OUT), b: (1, C_OUT)
        w_full = w_full.at[:k, :C_IN, bi * C_OUT:(bi + 1) * C_OUT].set(w)
        b_full = b_full.at[:, bi * C_OUT:(bi + 1) * C_OUT].set(b)
        louts.append(jnp.full((C_OUT,), L - k + 1, jnp.int32))
    lout_full = jnp.concatenate(louts)[None, :]                         # (1, N_FEAT)
    # permuted column c < HALF -> original feature 2c ; c >= HALF -> 2(c-HALF)+1
    perm = jnp.concatenate([jnp.arange(0, N_FEAT, 2), jnp.arange(1, N_FEAT, 2)])
    w_stacked = w_full[:, :, perm].reshape(K_STACK, N_FEAT).astype(jnp.bfloat16)
    return w_stacked, b_full[:, perm], lout_full[:, perm]


@jax.jit
def textcnn_forward(x_ncl, params):
    """x_ncl: (B, C_IN, L) float32 (PyTorch NCW layout). Returns (B, 1, 192) float32."""
    B = x_ncl.shape[0]
    # >= 2 grid blocks whenever B >= 2 so both v7x TensorCores get work; cap at BLOCK_B.
    bb = max(1, min(BLOCK_B, (B + 1) // 2))
    n_blk = (B + bb - 1) // bb
    Bpad = n_blk * bb

    w_c, b_c, lout_c = _prep_params(params)

    x_nlc = jnp.transpose(x_ncl, (0, 2, 1))                             # (B, L, C_IN)
    x_pad = jnp.pad(x_nlc, ((0, Bpad - B), (0, 0), (0, C_PAD - C_IN)))  # (Bpad, L, C_PAD)
    x2d = x_pad.astype(jnp.bfloat16).reshape(Bpad * L, C_PAD)           # bf16 input DMA

    out3d = pl.pallas_call(
        textcnn_kernel,
        out_shape=jax.ShapeDtypeStruct((n_blk, bb, HALF), jnp.float32),
        grid=(n_blk,),
        in_specs=[
            pl.BlockSpec((bb * L, C_PAD), lambda i: (i, 0)),
            pl.BlockSpec((K_STACK, N_FEAT), lambda i: (0, 0)),
            pl.BlockSpec((1, N_FEAT), lambda i: (0, 0)),
            pl.BlockSpec((1, N_FEAT), lambda i: (0, 0)),
        ],
        out_specs=pl.BlockSpec((1, bb, HALF), lambda i: (i, 0, 0)),
        compiler_params=pltpu.CompilerParams(dimension_semantics=("parallel",)),
    )(x2d, w_c, b_c, lout_c)

    return out3d.reshape(Bpad, HALF)[:B][:, None, :]                    # (B, 1, 192)


def init_params(key):
    """Deterministic Conv1d params, PyTorch-default uniform(-1/sqrt(fan_in), 1/sqrt(fan_in))."""
    params = []
    for k in KSIZES:
        key, kw, kb = jax.random.split(key, 3)
        bound = 1.0 / float(C_IN * k) ** 0.5
        w = jax.random.uniform(kw, (k, C_IN, C_OUT), jnp.float32, -bound, bound)
        b = jax.random.uniform(kb, (1, C_OUT), jnp.float32, -bound, bound)
        params.append((w, b))
    return params


def ref_forward(x_ncl, params):
    """Pure-JAX reference matching the PyTorch module (bf16 products, f32 accumulation,
    i.e. the same MXU precision the kernel uses)."""
    xb = x_ncl.astype(jnp.bfloat16)
    outs = []
    for (w, b), k in zip(params, KSIZES):
        w_oiw = jnp.transpose(w, (2, 1, 0)).astype(jnp.bfloat16)        # (C_OUT, C_IN, k)
        y = lax.conv_general_dilated(
            xb, w_oiw, window_strides=(1,), padding="VALID",
            dimension_numbers=("NCH", "OIH", "NCH"),
            preferred_element_type=jnp.float32)
        y = jnp.maximum(y + b.reshape(1, C_OUT, 1), 0.0)                # (B, C_OUT, L-k+1)
        outs.append(jnp.max(y, axis=2, keepdims=True))                  # (B, C_OUT, 1)
    cat = jnp.transpose(jnp.concatenate(outs, axis=1), (0, 2, 1))       # (B, 1, 384)
    B = cat.shape[0]
    return jnp.max(cat.reshape(B, 1, HALF, 2), axis=-1).reshape(B, 1, HALF)


if __name__ == "__main__":
    key = jax.random.PRNGKey(0)
    kx, kp = jax.random.split(key)
    # Input consistent with the module's hard-coded sizes: (batch=2, channels=100, seq=128).
    x = jax.random.normal(kx, (2, C_IN, L), jnp.float32)
    params = init_params(kp)

    out = textcnn_forward(x, params)
    jax.block_until_ready(out)

    ref = ref_forward(x, params)
    assert out.shape == (2, 1, HALF), out.shape
    assert jnp.allclose(out, ref, atol=1e-2, rtol=1e-2), float(jnp.max(jnp.abs(out - ref)))
    print("KERNEL_OK")
</pallas_src>

<mosaic_0001>
module attributes {stable_mosaic.version = 11 : i64} {
  func.func @textcnn_kernel(%arg0: i32, %arg1: memref<128x128xbf16, #tpu.memory_space<vmem>>, %arg2: memref<640x384xbf16, #tpu.memory_space<vmem>>, %arg3: memref<1x384xf32, #tpu.memory_space<vmem>>, %arg4: memref<1x384xi32, #tpu.memory_space<vmem>>, %arg5: memref<1x1x192xf32, #tpu.memory_space<vmem>>) attributes {dimension_semantics = [#tpu.dimension_semantics<parallel>], iteration_bounds = array<i64: 2>, scalar_prefetch = 0 : i64, scratch_operands = 0 : i64, tpu.core_type = #tpu.core_type<tc>, window_params = [{transform_indices = @transform_0, window_bounds = array<i64: 128, 128>}, {pipeline_mode = #tpu.pipeline_mode<synchronous>, transform_indices = @transform_1, window_bounds = array<i64: 640, 384>}, {pipeline_mode = #tpu.pipeline_mode<synchronous>, transform_indices = @transform_2, window_bounds = array<i64: 1, 384>}, {pipeline_mode = #tpu.pipeline_mode<synchronous>, transform_indices = @transform_3, window_bounds = array<i64: 1, 384>}, {transform_indices = @transform_4, window_bounds = array<i64: 1, 1, 192>}]} {
    %c0 = arith.constant 0 : index
    %c0_0 = arith.constant 0 : index
    %0 = vector.load %arg1[%c0, %c0_0] : memref<128x128xbf16, #tpu.memory_space<vmem>>, vector<128x128xbf16>
    %1 = arith.extf %0 : vector<128x128xbf16> to vector<128x128xf32>
    %c127_i32 = arith.constant 127 : i32
    %2 = tpu.dynamic_rotate %1 by %c127_i32 dim 0 : vector<128x128xf32>, i32 -> vector<128x128xf32>
    %3 = arith.truncf %2 : vector<128x128xf32> to vector<128x128xbf16>
    %c126_i32 = arith.constant 126 : i32
    %4 = tpu.dynamic_rotate %1 by %c126_i32 dim 0 : vector<128x128xf32>, i32 -> vector<128x128xf32>
    %5 = arith.truncf %4 : vector<128x128xf32> to vector<128x128xbf16>
    %c125_i32 = arith.constant 125 : i32
    %6 = tpu.dynamic_rotate %1 by %c125_i32 dim 0 : vector<128x128xf32>, i32 -> vector<128x128xf32>
    %7 = arith.truncf %6 : vector<128x128xf32> to vector<128x128xbf16>
    %c124_i32 = arith.constant 124 : i32
    %8 = tpu.dynamic_rotate %1 by %c124_i32 dim 0 : vector<128x128xf32>, i32 -> vector<128x128xf32>
    %9 = arith.truncf %8 : vector<128x128xf32> to vector<128x128xbf16>
    %10 = tpu.concatenate %0, %3, %5, %7, %9 in 1 : vector<128x128xbf16>, vector<128x128xbf16>, vector<128x128xbf16>, vector<128x128xbf16>, vector<128x128xbf16> -> vector<128x640xbf16>
    %c0_1 = arith.constant 0 : index
    %c0_2 = arith.constant 0 : index
    %11 = vector.load %arg2[%c0_1, %c0_2] : memref<640x384xbf16, #tpu.memory_space<vmem>>, vector<640x384xbf16>
    %cst = arith.constant dense<0.000000e+00> : vector<128x384xf32>
    %12 = tpu.matmul %10, %11, %cst {dimension_numbers = #tpu.dot_dimension_numbers<[1], [0], [0], [1], [0, 0, 1, 1], [], []>} : vector<128x640xbf16>, vector<640x384xbf16>, vector<128x384xf32> -> vector<128x384xf32>
    %13 = tpu.iota {dimensions = array<i32: 0>} : vector<128x1xi32>
    %c0_3 = arith.constant 0 : index
    %c0_4 = arith.constant 0 : index
    %14 = vector.load %arg4[%c0_3, %c0_4] : memref<1x384xi32, #tpu.memory_space<vmem>>, vector<1x384xi32>
    %15 = vector.broadcast %13 : vector<128x1xi32> to vector<128x384xi32>
    %16 = vector.broadcast %14 : vector<1x384xi32> to vector<128x384xi32>
    %17 = arith.cmpi slt, %15, %16 : vector<128x384xi32>
    %18 = vector.shape_cast %12 : vector<128x384xf32> to vector<1x128x384xf32>
    %19 = vector.shape_cast %17 : vector<128x384xi1> to vector<1x128x384xi1>
    %cst_5 = arith.constant 0xFF800000 : f32
    %20 = vector.broadcast %cst_5 : f32 to vector<1x128x384xf32>
    %21 = arith.select %19, %18, %20 : vector<1x128x384xi1>, vector<1x128x384xf32>
    %cst_6 = arith.constant dense<0xFF800000> : vector<1x384xf32>
    %22 = vector.multi_reduction <maximumf>, %21, %cst_6 [1] : vector<1x128x384xf32> to vector<1x384xf32>
    %c0_7 = arith.constant 0 : index
    %c0_8 = arith.constant 0 : index
    %23 = vector.load %arg3[%c0_7, %c0_8] : memref<1x384xf32, #tpu.memory_space<vmem>>, vector<1x384xf32>
    %24 = arith.addf %22, %23 : vector<1x384xf32>
    %cst_9 = arith.constant 0.000000e+00 : f32
    %25 = vector.broadcast %cst_9 : f32 to vector<1x384xf32>
    %26 = arith.maximumf %24, %25 : vector<1x384xf32>
    %27 = vector.extract_strided_slice %26 {offsets = [0, 0], sizes = [1, 192], strides = [1, 1]} : vector<1x384xf32> to vector<1x192xf32>
    %28 = vector.extract_strided_slice %26 {offsets = [0, 192], sizes = [1, 192], strides = [1, 1]} : vector<1x384xf32> to vector<1x192xf32>
    %29 = arith.maximumf %27, %28 : vector<1x192xf32>
    %c0_10 = arith.constant 0 : index
    %c0_11 = arith.constant 0 : index
    %c0_12 = arith.constant 0 : index
    %30 = vector.load %arg5[%c0_10, %c0_11, %c0_12] : memref<1x1x192xf32, #tpu.memory_space<vmem>>, vector<1x1x192xf32>
    %31 = vector.shape_cast %30 : vector<1x1x192xf32> to vector<1x192xf32>
    %32 = vector.shape_cast %29 : vector<1x192xf32> to vector<1x1x192xf32>
    tpu.vector_store %arg5[%c0_10, %c0_11, %c0_12], %32 {strides = array<i32>} : memref<1x1x192xf32, #tpu.memory_space<vmem>>, vector<1x1x192xf32>,
    return
  }
  func.func @transform_0(%arg0: i32) -> (i32, i32) {
    %c0_i32 = arith.constant 0 : i32
    %c0_i32_0 = arith.constant 0 : i32
    return %arg0, %c0_i32 : i32, i32
  }
  func.func @transform_1(%arg0: i32) -> (i32, i32) {
    %c0_i32 = arith.constant 0 : i32
    %c0_i32_0 = arith.constant 0 : i32
    %c0_i32_1 = arith.constant 0 : i32
    return %c0_i32, %c0_i32_0 : i32, i32
  }
  func.func @transform_2(%arg0: i32) -> (i32, i32) {
    %c0_i32 = arith.constant 0 : i32
    %c0_i32_0 = arith.constant 0 : i32
    %c0_i32_1 = arith.constant 0 : i32
    return %c0_i32, %c0_i32_0 : i32, i32
  }
  func.func @transform_3(%arg0: i32) -> (i32, i32) {
    %c0_i32 = arith.constant 0 : i32
    %c0_i32_0 = arith.constant 0 : i32
    %c0_i32_1 = arith.constant 0 : i32
    return %c0_i32, %c0_i32_0 : i32, i32
  }
  func.func @transform_4(%arg0: i32) -> (i32, i32, i32) {
    %c0_i32 = arith.constant 0 : i32
    %c0_i32_0 = arith.constant 0 : i32
    %c0_i32_1 = arith.constant 0 : i32
    return %arg0, %c0_i32, %c0_i32_0 : i32, i32, i32
  }
}

</mosaic_0001>

<bundles_post_ra>
// kernel: textcnn_forward.1
= control target key start
LH: loop header
LB: loop body
LE: loop exit
PB: predicated region body
PF: predicated region fallthrough
CT: control target
= control target key end

     0   :  { %9 = vsyncpa [#allocation3], 0  ;;  %s4250_s0 = inlined_call_operand.vmem [shape: bf16[256,128], index: 0, kind: input, shape index: {}]   ;;  %s4251_s1 = inlined_call_operand.vmem [shape: bf16[640,384], index: 1, kind: input, shape index: {}]   ;;  %s4252_s2 = inlined_call_operand.vmem [shape: f32[1,384], index: 2, kind: input, shape index: {}]   ;;  %s4253_s3 = inlined_call_operand.vmem [shape: s32[1,384], index: 3, kind: input, shape index: {}]   ;;  %s4254_s4 = inlined_call_operand.hbm [shape: f32[2,1,192], index: 4, kind: output, shape index: {}]  }
   0x1   :  { %11 = vsyncpa [#allocation3 + $0x1], 0  ;;  %s2918_s15 = smov 0   ;;  %s2920_s16 = smov 0  }
   0x2   :  { %s2922_s17 = smov 0   ;;  %s2924_s18 = smov 0  }
   0x3 LB: > { %s2939_s19 = sadd.s32 4294967295, %s2887_s18   ;;  %s2194_s20 = sadd.s32 4294967294, %s2887_s18   ;;  %s2887_s18 = sphi %s2924_s18, %s4281_s18   ;;  %s2883_s17 = sphi %s2922_s17, %s4280_s17   ;;  %s2879_s16 = sphi %s2920_s16, %s4279_s16   ;;  %s2875_s15 = sphi %s2918_s15, %s4278_s15  }
   0x4   : > { %s2943_s21 = sadd.s32 1, %s2887_s18   ;;  %s113_s22 = sadd.s32 1, %s2883_s17 }
   0x5   : > { %s110_s23 = ssub.s32 %s2887_s18, %s2943_s21  ;;  %p123_p0 = scmp.ne.s32.totalorder %s2883_s17, %s2879_s16 }
   0x6   : > { %p111_p1 = scmp.eq.s32.totalorder %s110_s23, 0  ;;  %p124_p2 = scmp.eq.s32.totalorder %s2939_s19, 1 }
   0x7   : > { %p129_p3 = scmp.ne.s32.totalorder %s2879_s16, %s2875_s15  ;;  %p130_p4 = scmp.eq.s32.totalorder %s2194_s20, 1 }
   0x8   : > { %s2954_s24 = scalar_select %p111_p1, %s2883_s17, %s113_s22  }
   0x9   : > { %p2956_p5 = por %p124_p2, %p123_p0  ;;  %p2960_p6 = por %p130_p4, %p129_p3 }
   0xa   : > { %p2197_p7 = scmp.ge.s32.totalorder %s2887_s18, 1  ;;  %p166_p8 = scmp.lt.s32.totalorder %s2887_s18, 3 }
   0xc   : > { %p167_p9 = pnand %p2197_p7, %p166_p8 }
   0xe   : > { %170 = sbr.rel (%p167_p9) target bundleno = 618 (0x26a), region = 36 }
  0x15   : > { %v2633_v0 = vld [vmem:[%s4251_s1 + $0x4] ss:$12 sps:$4 sm:$0xff]   ;;  %v2889_v2 = vmov 0   ;;  %v2637_v3 = vld [vmem:[%s4251_s1] ss:$12 sps:$4 sm:$0xff]   ;;  %s2199_s23 = sshll.u32 %s2939_s19, 4  ;;  %v4255_v19 = vlaneseq }
  0x16   : > { %v2635_v1 = vld [vmem:[%s4251_s1 + $0x304] ss:$12 sps:$4 sm:$0xff]   ;;  %1543 = vmatprep.mubr.bf16.mxu1 %v2889_v2  ;;  %1245 = vmatprep.subr.bf16.mxu0 %v2633_v0  ;;  %v2638_v4 = vld [vmem:[%s4251_s1 + $0x300] ss:$12 sps:$4 sm:$0xff]   ;;  %v2639_v5 = vld [vmem:[%s4251_s1 + $0x1c] ss:$12 sps:$4 sm:$0xff]  }
  0x17   : > { %2511 = vmatprep.subr.bf16.mxu1 %v2635_v1  ;;  %1246 = vmatpush1.bf16.msra.mxu0 %v2637_v3  ;;  %v2641_v6 = vld [vmem:[%s4251_s1 + $0x31c] ss:$12 sps:$4 sm:$0xff]   ;;  %v2643_v7 = vld [vmem:[%s4251_s1 + $0x18] ss:$12 sps:$4 sm:$0xff]   ;;  %v2645_v9 = vld [vmem:[%s4251_s1 + $0x34] ss:$12 sps:$4 sm:$0xff]  }
  0x18   : > { %2519 = vmatpush1.bf16.msra.mxu1 %v2638_v4  ;;  %1247 = vmatprep.subr.bf16.mxu0 %v2639_v5  ;;  %v2644_v8 = vld [vmem:[%s4251_s1 + $0x318] ss:$12 sps:$4 sm:$0xff]   ;;  %v2647_v10 = vld [vmem:[%s4251_s1 + $0x334] ss:$12 sps:$4 sm:$0xff]   ;;  %v2649_v11 = vld [vmem:[%s4251_s1 + $0x30] ss:$12 sps:$4 sm:$0xff]  }
  0x19   : > { %2512 = vmatprep.subr.bf16.mxu1 %v2641_v6  ;;  %v2650_v12 = vld [vmem:[%s4251_s1 + $0x330] ss:$12 sps:$4 sm:$0xff]   ;;  %v2651_v13 = vld [vmem:[%s4251_s1 + $0x4c] ss:$12 sps:$4 sm:$0xff]   ;;  %p193_p10 = scmp.lt.s32.totalorder %s2199_s23, 31  ;;  %v3035_v24 = vshrl.u32 %v4255_v19, 7 }
  0x1a   : > { %v2653_v14 = vld [vmem:[%s4251_s1 + $0x34c] ss:$12 sps:$4 sm:$0xff]   ;;  %v2655_v15 = vld [vmem:[%s4251_s1 + $0x48] ss:$12 sps:$4 sm:$0xff]   ;;  %v2657_v17 = vld [vmem:[%s4251_s1 + $0x64] ss:$12 sps:$4 sm:$0xff]  }
  0x1b   : > { %1248 = vmatpush1.bf16.msra.mxu0 %v2643_v7  ;;  %v2656_v16 = vld [vmem:[%s4251_s1 + $0x348] ss:$12 sps:$4 sm:$0xff]   ;;  %s4283_s23 = smov (!%p193_p10, %s2199_s23), 31  ;;  %v2659_v18 = vld [vmem:[%s4251_s1 + $0x364] ss:$12 sps:$4 sm:$0xff]   ;;  %vm372_vm0 = vcmp.lt.s32.totalorder %v3035_v24, 4 }
  0x1c   : > { %2520 = vmatpush1.bf16.msra.mxu1 %v2644_v8  ;;  %1249 = vmatprep.subr.bf16.mxu0 %v2645_v9  ;;  %v2661_v20 = vld [vmem:[%s4251_s1 + $0x60] ss:$12 sps:$4 sm:$0xff]   ;;  %v2663_v22 = vld [vmem:[%s4251_s1 + $0x7c] ss:$12 sps:$4 sm:$0xff]   ;;  %s2200_s11 = sshll.u32 %s4283_s23, 2  ;;  %vm249_vm1 = vcmp.lt.s32.totalorder %v3035_v24, 7 }
  0x1d   : > { %2513 = vmatprep.subr.bf16.mxu1 %v2647_v10  ;;  %v2662_v21 = vld [vmem:[%s4251_s1 + $0x360] ss:$12 sps:$4 sm:$0xff]   ;;  %v2665_v23 = vld [vmem:[%s4251_s1 + $0x37c] ss:$12 sps:$4 sm:$0xff]   ;;  %v2667_v25 = vld [vmem:[%s4251_s1 + $0x78] ss:$12 sps:$4 sm:$0xff]   ;;  %s3043_s28 = scalar_lea.vmem %s4250_s0, %s2200_s11 }
  0x1e   : > { %v2668_v26 = vld [vmem:[%s4251_s1 + $0x378] ss:$12 sps:$4 sm:$0xff]   ;;  %v2669_v27 = vld [vmem:[%s4251_s1 + $0x94] ss:$12 sps:$4 sm:$0xff]   ;;  %v2673_v29 = vld [vmem:[%s4251_s1 + $0x90] ss:$12 sps:$4 sm:$0xff]  }
  0x1f   : > { %1250 = vmatpush1.bf16.msra.mxu0 %v2649_v11  ;;  %v2671_v28 = vld [vmem:[%s4251_s1 + $0x394] ss:$12 sps:$4 sm:$0xff]   ;;  %v3061_v31 = vld [vmem:[%s3043_s28 + $0x28] sm:$0xff]   ;;  %v2674_v32 = vld [vmem:[%s4251_s1 + $0x390] ss:$12 sps:$4 sm:$0xff]   ;;  %vm331_vm2 = vcmp.lt.s32.totalorder %v3035_v24, 5 }
  0x20   : > { %2521 = vmatpush1.bf16.msra.mxu1 %v2650_v12  ;;  %1251 = vmatprep.subr.bf16.mxu0 %v2651_v13  ;;  %v3058_v30 = vld [vmem:[%s3043_s28 + $0x20] sm:$0xff]   ;;  %v3074_v35 = vunpack.c.l.bf16 %v3061_v31  ;;  %v2675_v36 = vld [vmem:[%s4251_s1 + $0xac] ss:$12 sps:$4 sm:$0xff]   ;;  %v2679_v41 = vld [vmem:[%s4251_s1 + $0xa8] ss:$12 sps:$4 sm:$0xff]   ;;  %v3101_v46 = vunpack.c.h.bf16 %v3061_v31  ;;  %vm290_vm3 = vcmp.lt.s32.totalorder %v3035_v24, 6 }
  0x21   : > { %2514 = vmatprep.subr.bf16.mxu1 %v2653_v14  ;;  %v3068_v33 = vunpack.c.l.bf16 %v3058_v30  ;;  %v3071_v34 = vunpack.c.h.bf16 %v3058_v30  ;;  %v2677_v37 = vld [vmem:[%s4251_s1 + $0x3ac] ss:$12 sps:$4 sm:$0xff]   ;;  %v2680_v42 = vld [vmem:[%s4251_s1 + $0x3a8] ss:$12 sps:$4 sm:$0xff]   ;;  %v2681_v43 = vld [vmem:[%s4251_s1 + $0xc4] ss:$12 sps:$4 sm:$0xff]  }
  0x22   : > { %v366_v40 = vrot.slane %v3074_v35, 4  ;;  %v2683_v47 = vld [vmem:[%s4251_s1 + $0xc8] ss:$12 sps:$4 sm:$0xff]   ;;  %v2684_v50 = vld [vmem:[%s4251_s1 + $0xc0] ss:$12 sps:$4 sm:$0xff]   ;;  %v367_v54 = vrot.slane %v3101_v46, 4 }
  0x23   : > { %1252 = vmatpush1.bf16.msra.mxu0 %v2655_v15  ;;  %v364_v38 = vrot.slane %v3068_v33, 4  ;;  %v365_v39 = vrot.slane %v3071_v34, 4  ;;  %v3107_v48 = vld [vmem:[%s3043_s28 + $0x30] sm:$0xff]   ;;  %v2686_v53 = vld [vmem:[%s4251_s1 + $0xdc] ss:$12 sps:$4 sm:$0xff]   ;;  %v3183_v14 = vld [vmem:[%s3043_s28] sm:$0xff]  }
  0x24   : > { %2522 = vmatpush1.bf16.msra.mxu1 %v2656_v16  ;;  %1253 = vmatprep.subr.bf16.mxu0 %v2657_v17  ;;  %v2685_v51 = vld [vmem:[%s4251_s1 + $0x8] ss:$12 sps:$4 sm:$0xff]   ;;  %v3118_v52 = vunpack.c.l.bf16 %v3107_v48  ;;  %v2688_v55 = vld [vmem:[%s4251_s1 + $0xe0] ss:$12 sps:$4 sm:$0xff]   ;;  %v2689_v57 = vld [vmem:[%s4251_s1 + $0xd8] ss:$12 sps:$4 sm:$0xff]   ;;  %v377_v61 = vsel %vm372_vm0, %v366_v40, %v367_v54  ;;  %v3146_v63 = vunpack.c.h.bf16 %v3107_v48 }
  0x25   : > { %2515 = vmatprep.subr.bf16.mxu1 %v2659_v18  ;;  %v378_v44 = vsel %vm372_vm0, %v365_v39, %v366_v40  ;;  %v379_v45 = vsel %vm372_vm0, %v364_v38, %v365_v39  ;;  %v2690_v58 = vld [vmem:[%s4251_s1 + $0x20] ss:$12 sps:$4 sm:$0xff]   ;;  %v2693_v62 = vld [vmem:[%s4251_s1 + $0xf8] ss:$12 sps:$4 sm:$0xff]   ;;  %v2694_v1 = vld [vmem:[%s4251_s1 + $0xf0] ss:$12 sps:$4 sm:$0xff]   ;;  %v3195_v18 = vunpack.c.l.bf16 %v3183_v14 }
  0x26   : > { %v3109_v49 = vpack.c.bf16 %v378_v44, %v379_v45  ;;  %v368_v56 = vrot.slane %v3118_v52, 4  ;;  %v2691_v59 = vld [vmem:[%s4251_s1 + $0xf4] ss:$12 sps:$4 sm:$0xff]   ;;  %v3149_v0 = vld [vmem:[%s3043_s28 + $0x38] sm:$0xff]   ;;  %v369_v6 = vrot.slane %v3146_v63, 4  ;;  %s2890_s20 = smov 64  }
  0x27   : > { %1254 = vmatpush1.bf16.msra.mxu0 %v2661_v20  ;;  %v3156_v3 = vunpack.c.l.bf16 %v3149_v0  ;;  %v2695_v5 = vld [vmem:[%s4251_s1 + $0x38] ss:$12 sps:$4 sm:$0xff]   ;;  %v2698_v9 = vld [vmem:[%s4251_s1 + $0x110] ss:$12 sps:$4 sm:$0xff]   ;;  %v2699_v10 = vld [vmem:[%s4251_s1 + $0x108] ss:$12 sps:$4 sm:$0xff]   ;;  %v3186_v15 = vunpack.c.h.bf16 %v3149_v0 }
  0x28   : > { %2523 = vmatpush1.bf16.msra.mxu1 %v2662_v21  ;;  %1255 = vmatprep.subr.bf16.mxu0 %v2663_v22  ;;  %v376_v60 = vsel %vm372_vm0, %v367_v54, %v368_v56  ;;  %v2696_v8 = vld [vmem:[%s4251_s1 + $0x10c] ss:$12 sps:$4 sm:$0xff]   ;;  %v2700_v11 = vld [vmem:[%s4251_s1 + $0x50] ss:$12 sps:$4 sm:$0xff]   ;;  %v375_v13 = vsel %vm372_vm0, %v368_v56, %v369_v6  ;;  %v2703_v17 = vld [vmem:[%s4251_s1 + $0x128] ss:$12 sps:$4 sm:$0xff]   ;;  %v3202_v21 = vunpack.c.h.bf16 %v3183_v14 }
  0x29   : > { %2516 = vmatprep.subr.bf16.mxu1 %v2665_v23  ;;  %v3158_v4 = vpack.c.bf16 %v376_v60, %v377_v61  ;;  %v370_v7 = vrot.slane %v3156_v3, 4  ;;  %v2701_v16 = vld [vmem:[%s4251_s1 + $0x124] ss:$12 sps:$4 sm:$0xff]   ;;  %v2704_v20 = vld [vmem:[%s4251_s1 + $0x120] ss:$12 sps:$4 sm:$0xff]   ;;  %s189_s22 = sand.u32 1, %s2879_s16  }
  0x2a   : > { %v2705_v23 = vld [vmem:[%s4251_s1 + $0x68] ss:$12 sps:$4 sm:$0xff]   ;;  %v2709_v39 = vld [vmem:[%s4251_s1 + $0x138] ss:$12 sps:$4 sm:$0xff]   ;;  %v2710_v40 = vld [vmem:[%s4251_s1 + $0x80] ss:$12 sps:$4 sm:$0xff]  }
  0x2b   : > { %1256 = vmatpush1.bf16.msra.mxu0 %v2667_v25  ;;  %v374_v12 = vsel %vm372_vm0, %v369_v6, %v370_v7  ;;  %v2706_v25 = vld [vmem:[%s4251_s1 + $0x13c] ss:$12 sps:$4 sm:$0xff]   ;;  %v2715_v60 = vld [vmem:[%s4251_s1 + $0x98] ss:$12 sps:$4 sm:$0xff]   ;;  %s2198_s27 = sshll.u32 %s189_s22, 1  ;;  %s2334_s23 = sshll.u32 %s2939_s19, 5 }
  0x2c   : > { %2524 = vmatpush1.bf16.msra.mxu1 %v2668_v26  ;;  %1257 = vmatprep.subr.bf16.mxu0 %v2669_v27  ;;  %v3205_v22 = vpack.c.bf16 %v374_v12, %v375_v13  ;;  %v356_v26 = vrot.slane %v3195_v18, 4  ;;  %v371_v27 = vrot.slane %v3186_v15, 4  ;;  %v2714_v56 = vld [vmem:[%s4251_s1 + $0x150] ss:$12 sps:$4 sm:$0xff]   ;;  %v275_v12 = vrot.slane %v3202_v21, 2  ;;  %s191_s29 = scalar_lea.vmem [#allocation2], %s2198_s27  ;;  %s4208_s6 = scalar_lea.hbm %s4254_s4, %s2334_s23 }
  0x2d   : > { %2517 = vmatprep.subr.bf16.mxu1 %v2671_v28  ;;  %v2708_v28 = vld [vmem:[%s4251_s1 + $0x140] ss:$12 sps:$4 sm:$0xff]   ;;  %s2121_s7 = scalar_lea.sflag [#allocation3], %s189_s22  ;;  %s2892_s19 = smov [#allocation2]  }
  0x2e   : > { %v373_v44 = vsel %vm372_vm0, %v370_v7, %v371_v27  ;;  %v388_v45 = vsel %vm372_vm0, %v371_v27, %v356_v26  ;;  %v274_v7 = vrot.slane %v3195_v18, 2  ;;  %s2829_s9 = sshll.u32 %s2892_s19, 4  ;;  %s2830_s9 = int_to_ptr.vmem [resolvable:$false] %s2829_s9 }
  0x2f   : > { %1258 = vmatpush1.bf16.msra.mxu0 %v2673_v29  ;;  %v3220_v29 = vld [vmem:[%s3043_s28 + $0x8] sm:$0xff]   ;;  %s2831_s10 = scalar_lea.vmem %s2830_s9, 64 }
  0x30   : > { %2525 = vmatpush1.bf16.msra.mxu1 %v2674_v32  ;;  %1259 = vmatprep.subr.bf16.mxu0 %v2675_v36  ;;  %v231_v32 = vrot.slane %v3195_v18, 1  ;;  %v232_v36 = vrot.slane %v3202_v21, 1  ;;  %v3257_v54 = vunpack.c.h.bf16 %v3220_v29 }
  0x31   : > { %2518 = vmatprep.subr.bf16.mxu1 %v2677_v37  ;;  %v315_v37 = vrot.slane %v3195_v18, 3  ;;  %v2779_v18 = vld [vmem:[%s4251_s1 + $0x2b8] ss:$12 sps:$4 sm:$0xff]  }
  0x33   : > { %1260 = vmatpush1.bf16.msra.mxu0 %v2679_v41  ;;  %v3233_v41 = vunpack.c.l.bf16 %v3220_v29 }
  0x34   : > { %2526 = vmatpush1.bf16.msra.mxu1 %v2680_v42  ;;  %1261 = vmatprep.subr.bf16.mxu0 %v2681_v43  ;;  %v316_v42 = vrot.slane %v3202_v21, 3  ;;  %v2711_v43 = vld [vmem:[%s4251_s1 + $0x154] ss:$12 sps:$4 sm:$0xff]  }
  0x35   : > { %2335 = vmatprep.subr.bf16.mxu1 %v2683_v47  ;;  %v2713_v47 = vld [vmem:[%s4251_s1 + $0x158] ss:$12 sps:$4 sm:$0xff]   ;;  %v276_v13 = vrot.slane %v3233_v41, 2 }
  0x37   : > { %1544 = vmatmul.mubr.bf16.vlgmr.msra.gmra.mrb[0].mxu1 %v3109_v49  ;;  %1262 = vmatpush1.bf16.msra.mxu0 %v2684_v50  ;;  %v233_v50 = vrot.slane %v3233_v41, 1  ;;  %v304_v27 = vsel %vm290_vm3, %v275_v12, %v276_v13 }
  0x38   : > { %2336 = vmatpush3.bf16.msra.mxu1 %v2685_v51  ;;  %1263 = vmatprep.subr.bf16.mxu0 %v2686_v53  ;;  %v264_v51 = vsel %vm249_vm1, %v231_v32, %v232_v36  ;;  %v3254_v53 = vld [vmem:[%s3043_s28 + $0x10] sm:$0xff]  }
  0x39   : > { %2337 = vmatprep.subr.bf16.mxu1 %v2688_v55  ;;  %1553 = vmatprep.mubr.bf16.mxu1 %v2889_v2  ;;  %v317_v55 = vrot.slane %v3233_v41, 3  ;;  %v263_v61 = vsel %vm249_vm1, %v232_v36, %v233_v50 }
  0x3b   : > { %1264 = vmatpush1.bf16.msra.mxu0 %v2689_v57  ;;  %v3265_v57 = vunpack.c.l.bf16 %v3254_v53 }
  0x3c   : > { %2338 = vmatpush3.bf16.msra.mxu1 %v2690_v58  ;;  %1265 = vmatprep.subr.bf16.mxu0 %v2691_v59  ;;  %v346_v58 = vsel %vm331_vm2, %v315_v37, %v316_v42  ;;  %v3271_v59 = vpack.c.bf16 %v388_v45, %v373_v44  ;;  %v2722_v45 = vld [vmem:[%s4251_s1 + $0x180] ss:$12 sps:$4 sm:$0xff]  }
  0x3d   : > { %2339 = vmatprep.subr.bf16.mxu1 %v2693_v62  ;;  %v345_v62 = vsel %vm331_vm2, %v316_v42, %v317_v55  ;;  %v2732_v42 = vld [vmem:[%s4251_s1 + $0x248] ss:$12 sps:$4 sm:$0xff]  }
  0x3e   : > { %v3283_v6 = vpack.c.bf16 %v345_v62, %v346_v58 }
  0x3f   : > { %1554 = vmatmul.mubr.bf16.gmra.mrb[4].mxu1 %v3158_v4  ;;  %1266 = vmatpush1.bf16.msra.mxu0 %v2694_v1  ;;  %v2716_v1 = vld [vmem:[%s4251_s1 + $0x16c] ss:$12 sps:$4 sm:$0xff]  }
  0x40   : > { %2340 = vmatpush3.bf16.msra.mxu1 %v2695_v5  ;;  %1267 = vmatprep.subr.bf16.mxu0 %v2696_v8  ;;  %v266_v5 = vpack.c.bf16 %v263_v61, %v264_v51  ;;  %v2718_v8 = vld [vmem:[%s4251_s1 + $0x170] ss:$12 sps:$4 sm:$0xff]   ;;  %v319_v51 = vrot.slane %v3265_v57, 3 }
  0x41   : > { %2341 = vmatprep.subr.bf16.mxu1 %v2698_v9  ;;  %1563 = vmatprep.mubr.bf16.mxu1 %v2889_v2  ;;  %v234_v9 = vrot.slane %v3257_v54, 1 }
  0x42   : > { %1277 = vmatprep.mubr.bf16.mxu0 %v266_v5 }
  0x43   : > { %1268 = vmatpush1.bf16.msra.mxu0 %v2699_v10  ;;  %v235_v10 = vrot.slane %v3265_v57, 1 }
  0x44   : > { %2342 = vmatpush3.bf16.msra.mxu1 %v2700_v11  ;;  %1269 = vmatprep.subr.bf16.mxu0 %v2701_v16  ;;  %v3293_v11 = vld [vmem:[%s3043_s28 + $0x18] sm:$0xff]   ;;  %v318_v16 = vrot.slane %v3257_v54, 3  ;;  %s2135_s28 = sshll.u32 %s191_s29, 4  ;;  %s4210_s28 = int_to_ptr.vmem [resolvable:$true] %s2135_s28 }
  0x45   : > { %2343 = vmatprep.subr.bf16.mxu1 %v2703_v17  ;;  %v2719_v17 = vld [vmem:[%s4251_s1 + $0x168] ss:$12 sps:$4 sm:$0xff]   ;;  %s2825_s8 = scalar_lea.vmem %s4210_s28, 32  ;;  %p2832_p0 = scmp.lt.s32.totalorder %s4210_s28, %s2830_s9 }
  0x46   : > { %v344_v36 = vsel %vm331_vm2, %v317_v55, %v318_v16  ;;  %v2727_v55 = vld [vmem:[%s4251_s1 + $0x19c] ss:$12 sps:$4 sm:$0xff]   ;;  %v343_v61 = vsel %vm331_vm2, %v318_v16, %v319_v51  ;;  %p2826_p11 = scmp.ne.s32.totalorder %s4210_s28, %s2825_s8  ;;  %p2833_p1 = scmp.lt.s32.totalorder %s2831_s10, %s2825_s8 }
  0x47   : > { %1564 = vmatmul.mubr.bf16.gmra.mrb[8].mxu1 %v3205_v22  ;;  %1270 = vmatpush1.bf16.msra.mxu0 %v2704_v20  ;;  %v2720_v20 = vld [vmem:[%s4251_s1 + $0xb0] ss:$12 sps:$4 sm:$0xff]  }
  0x48   : > { %2344 = vmatpush3.bf16.msra.mxu1 %v2705_v23  ;;  %1271 = vmatprep.subr.bf16.mxu0 %v2706_v25  ;;  %v3306_v23 = vunpack.c.h.bf16 %v3254_v53  ;;  %v2724_v25 = vld [vmem:[%s4251_s1 + $0x184] ss:$12 sps:$4 sm:$0xff]   ;;  %p2827_p12 = pnand %p2826_p11, %p2956_p5  ;;  %p2834_p2 = por %p2833_p1, %p2832_p0 }
  0x49   : > { %2345 = vmatprep.subr.bf16.mxu1 %v2708_v28  ;;  %1573 = vmatprep.mubr.bf16.mxu1 %v2889_v2  ;;  %v305_v28 = vsel %vm290_vm3, %v274_v7, %v275_v12 }
  0x4a   : > { %v3329_v44 = vpack.c.bf16 %v304_v27, %v305_v28  ;;  %v279_v28 = vrot.slane %v3306_v23, 2  ;;  %p2828_p13 = pneg %p2827_p12 }
  0x4b   : > { %1272 = vmatpush1.bf16.msra.mxu0 %v2709_v39  ;;  %v261_v39 = vsel %vm249_vm1, %v234_v9, %v235_v10 }
  0x4c   : > { %2346 = vmatpush3.bf16.msra.mxu1 %v2710_v40  ;;  %1273 = vmatprep.subr.bf16.mxu0 %v2711_v43  ;;  %v262_v40 = vsel %vm249_vm1, %v233_v50, %v234_v9  ;;  %v3327_v43 = vunpack.c.l.bf16 %v3293_v11  ;;  %v277_v50 = vrot.slane %v3257_v54, 2  ;;  %v320_v9 = vrot.slane %v3306_v23, 3  ;;  %p2835_p3 = pnand %p2834_p2, %p2828_p13 }
  0x4d   : > { %2347 = vmatprep.subr.bf16.mxu1 %v2713_v47  ;;  %v236_v47 = vrot.slane %v3306_v23, 1 }
  0x4e   : > { %v237_v58 = vrot.slane %v3327_v43, 1  ;;  %v303_v62 = vsel %vm290_vm3, %v276_v13, %v277_v50  ;;  %v2741_v13 = vld [vmem:[%s4251_s1 + $0x260] ss:$12 sps:$4 sm:$0xff]   ;;  %v321_v16 = vrot.slane %v3327_v43, 3  ;;  %v342_v27 = vsel %vm331_vm2, %v319_v51, %v320_v9 }
  0x4f   : > { %1574 = vmatmul.mubr.bf16.gmra.mrb[12].mxu1 %v3271_v59  ;;  %1274 = vmatpush1.bf16.msra.mxu0 %v2714_v56  ;;  %v267_v56 = vpack.c.bf16 %v261_v39, %v262_v40  ;;  %v260_v12 = vsel %vm249_vm1, %v235_v10, %v236_v47 }
  0x50   : > { %2348 = vmatpush3.bf16.msra.mxu1 %v2715_v60  ;;  %1275 = vmatprep.subr.bf16.mxu0 %v2716_v1  ;;  %v239_v60 = vrot.slane %v3068_v33, 1  ;;  %v2733_v1 = vld [vmem:[%s4251_s1 + $0x188] ss:$12 sps:$4 sm:$0xff]   ;;  %v259_v39 = vsel %vm249_vm1, %v236_v47, %v237_v58  ;;  %v280_v47 = vrot.slane %v3327_v43, 2 }
  0x51   : > { %2349 = vmatprep.subr.bf16.mxu1 %v2718_v8  ;;  %1616 = vmatprep.mubr.bf16.mxu1 %v266_v5  ;;  %v3349_v5 = vpack.c.bf16 %v343_v61, %v344_v36  ;;  %v278_v8 = vrot.slane %v3265_v57, 2  ;;  %v2731_v36 = vld [vmem:[%s4251_s1 + $0x1b4] ss:$12 sps:$4 sm:$0xff]   ;;  %v268_v61 = vpack.c.bf16 %v259_v39, %v260_v12 }
  0x53   : > { %1276 = vmatpush1.bf16.msra.mxu0 %v2719_v17  ;;  %v323_v17 = vrot.slane %v3068_v33, 3  ;;  %v302_v10 = vsel %vm290_vm3, %v277_v50, %v278_v8  ;;  %v301_v50 = vsel %vm290_vm3, %v278_v8, %v279_v28  ;;  %v2736_v8 = vld [vmem:[%s4251_s1 + $0x1cc] ss:$12 sps:$4 sm:$0xff]  }
  0x54   : > { %2350 = vmatpush3.bf16.msra.mxu1 %v2720_v20  ;;  %1358 = vmatprep.subr.bf16.mxu0 %v2724_v25  ;;  %v282_v20 = vrot.slane %v3068_v33, 2  ;;  %v2725_v25 = vld [vmem:[%s4251_s1 + $0x198] ss:$12 sps:$4 sm:$0xff]   ;;  %v3381_v40 = vpack.c.bf16 %v302_v10, %v303_v62  ;;  %v2765_v33 = vld [vmem:[%s4251_s1 + $0x270] ss:$12 sps:$4 sm:$0xff]  }
  0x55   : > { %2399 = vmatprep.subr.bf16.mxu1 %v2732_v42  ;;  %v341_v42 = vsel %vm331_vm2, %v320_v9, %v321_v16  ;;  %v324_v9 = vrot.slane %v3071_v34, 3 }
  0x56   : > { %1278 = vmatmul.mubr.bf16.vlgmr.msra.gmra.mrb[0].mxu0 %v3183_v14  ;;  %v3388_v51 = vpack.c.bf16 %v341_v42, %v342_v27 }
  0x57   : > { %1617 = vmatmul.mubr.bf16.vlgmr.msra.gmra.mrb[16].mxu1 %v3183_v14  ;;  %1359 = vmatpush1.bf16.msra.mxu0 %v2722_v45  ;;  %v3367_v14 = vunpack.c.h.bf16 %v3293_v11  ;;  %v2742_v45 = vld [vmem:[%s4251_s1 + $0x1a0] ss:$12 sps:$4 sm:$0xff]  }
  0x58   : > { %1287 = vmatprep.mubr.bf16.mxu0 %v267_v56  ;;  %1360 = vmatprep.subr.bf16.mxu0 %v2727_v55  ;;  %v2729_v55 = vld [vmem:[%s4251_s1 + $0x1b0] ss:$12 sps:$4 sm:$0xff]  }
  0x59   : > { %1624 = vmatprep.mubr.bf16.mxu1 %v267_v56  ;;  %2400 = vmatpush3.bf16.msra.mxu1 %v2733_v1  ;;  %v322_v56 = vrot.slane %v3367_v14, 3  ;;  %v238_v62 = vrot.slane %v3367_v14, 1  ;;  %v281_v1 = vrot.slane %v3367_v14, 2 }
  0x5a   : > { %2401 = vmatprep.subr.bf16.mxu1 %v2741_v13  ;;  %v300_v13 = vsel %vm290_vm3, %v279_v28, %v280_v47 }
  0x5b   : > { %1361 = vmatpush1.bf16.msra.mxu0 %v2725_v25  ;;  %v339_v10 = vsel %vm331_vm2, %v322_v56, %v323_v17  ;;  %v340_v12 = vsel %vm331_vm2, %v321_v16, %v322_v56  ;;  %v2750_v25 = vld [vmem:[%s4251_s1 + $0x278] ss:$12 sps:$4 sm:$0xff]   ;;  %v3412_v27 = vpack.c.bf16 %v300_v13, %v301_v50  ;;  %v298_v39 = vsel %vm290_vm3, %v281_v1, %v282_v20  ;;  %v2759_v56 = vld [vmem:[%s4251_s1 + $0x290] ss:$12 sps:$4 sm:$0xff]  }
  0x5c   : > { %1362 = vmatprep.subr.bf16.mxu0 %v2731_v36  ;;  %v3414_v36 = vpack.c.bf16 %v339_v10, %v340_v12  ;;  %v299_v28 = vsel %vm290_vm3, %v280_v47, %v281_v1  ;;  %v2751_v16 = vld [vmem:[%s4251_s1 + $0x1b8] ss:$12 sps:$4 sm:$0xff]   ;;  %v338_v50 = vsel %vm331_vm2, %v323_v17, %v324_v9  ;;  %v2734_v47 = vld [vmem:[%s4251_s1 + $0x1c8] ss:$12 sps:$4 sm:$0xff]   ;;  %v283_v1 = vrot.slane %v3071_v34, 2 }
  0x5d   : > { %2402 = vmatpush3.bf16.msra.mxu1 %v2742_v45  ;;  %v3425_v42 = vpack.c.bf16 %v298_v39, %v299_v28  ;;  %v325_v45 = vrot.slane %v3074_v35, 3  ;;  %v2740_v17 = vld [vmem:[%s4251_s1 + $0x1e4] ss:$12 sps:$4 sm:$0xff]   ;;  %v284_v10 = vrot.slane %v3074_v35, 2  ;;  %v326_v12 = vrot.slane %v3101_v46, 3 }
  0x5e   : > { %1288 = vmatmul.mubr.bf16.gmra.mrb[4].mxu0 %v3220_v29  ;;  %2403 = vmatprep.subr.bf16.mxu1 %v2750_v25 }
  0x5f   : > { %1625 = vmatmul.mubr.bf16.gmra.mrb[20].mxu1 %v3220_v29  ;;  %1363 = vmatpush1.bf16.msra.mxu0 %v2729_v55  ;;  %v257_v29 = vsel %vm249_vm1, %v238_v62, %v239_v60  ;;  %v258_v55 = vsel %vm249_vm1, %v237_v58, %v238_v62  ;;  %v337_v13 = vsel %vm331_vm2, %v324_v9, %v325_v45  ;;  %v2738_v62 = vld [vmem:[%s4251_s1 + $0x1e0] ss:$12 sps:$4 sm:$0xff]  }
  0x60   : > { %1297 = vmatprep.mubr.bf16.mxu0 %v268_v61  ;;  %1364 = vmatprep.subr.bf16.mxu0 %v2736_v8  ;;  %v3452_v39 = vpack.c.bf16 %v337_v13, %v338_v50  ;;  %v240_v8 = vrot.slane %v3071_v34, 1  ;;  %v296_v28 = vsel %vm290_vm3, %v283_v1, %v284_v10  ;;  %v336_v58 = vsel %vm331_vm2, %v325_v45, %v326_v12  ;;  %v2745_v34 = vld [vmem:[%s4251_s1 + $0x1fc] ss:$12 sps:$4 sm:$0xff]   ;;  %v2743_v13 = vld [vmem:[%s4251_s1 + $0x1f8] ss:$12 sps:$4 sm:$0xff]  }
  0x61   : > { %1632 = vmatprep.mubr.bf16.mxu1 %v268_v61  ;;  %v297_v61 = vsel %vm290_vm3, %v282_v20, %v283_v1  ;;  %2404 = vmatpush3.bf16.msra.mxu1 %v2751_v16  ;;  %v269_v9 = vpack.c.bf16 %v257_v29, %v258_v55  ;;  %v327_v20 = vrot.slane %v3118_v52, 3  ;;  %v285_v16 = vrot.slane %v3101_v46, 2  ;;  %v2760_v29 = vld [vmem:[%s4251_s1 + $0x1d0] ss:$12 sps:$4 sm:$0xff]  }
  0x62   : > { %2405 = vmatprep.subr.bf16.mxu1 %v2759_v56  ;;  %v3464_v25 = vpack.c.bf16 %v296_v28, %v297_v61  ;;  %v241_v45 = vrot.slane %v3074_v35, 1  ;;  %v242_v50 = vrot.slane %v3101_v46, 1  ;;  %v243_v56 = vrot.slane %v3118_v52, 1  ;;  %v2768_v35 = vld [vmem:[%s4251_s1 + $0x2a8] ss:$12 sps:$4 sm:$0xff]  }
  0x63   : > { %1365 = vmatpush1.bf16.msra.mxu0 %v2734_v47  ;;  %v286_v47 = vrot.slane %v3118_v52, 2  ;;  %v335_v1 = vsel %vm331_vm2, %v326_v12, %v327_v20  ;;  %v328_v55 = vrot.slane %v3146_v63, 3  ;;  %v2749_v12 = vld [vmem:[%s4251_s1 + $0x214] ss:$12 sps:$4 sm:$0xff]   ;;  %v256_v28 = vsel %vm249_vm1, %v239_v60, %v240_v8  ;;  %v2747_v60 = vld [vmem:[%s4251_s1 + $0x210] ss:$12 sps:$4 sm:$0xff]  }
  0x64   : > { %1366 = vmatprep.subr.bf16.mxu0 %v2740_v17  ;;  %v295_v17 = vsel %vm290_vm3, %v284_v10, %v285_v16  ;;  %v3488_v46 = vpack.c.bf16 %v335_v1, %v336_v58  ;;  %v255_v61 = vsel %vm249_vm1, %v240_v8, %v241_v45  ;;  %v329_v58 = vrot.slane %v3156_v3, 3  ;;  %v2754_v1 = vld [vmem:[%s4251_s1 + $0x22c] ss:$12 sps:$4 sm:$0xff]  }
  0x65   : > { %v294_v52 = vsel %vm290_vm3, %v285_v16, %v286_v47  ;;  %2406 = vmatpush3.bf16.msra.mxu1 %v2760_v29  ;;  %v270_v8 = vpack.c.bf16 %v255_v61, %v256_v28  ;;  %v357_v61 = vrot.slane %v3202_v21, 4  ;;  %v245_v28 = vrot.slane %v3156_v3, 1 }
  0x66   : > { %1298 = vmatmul.mubr.bf16.gmra.mrb[8].mxu0 %v3254_v53  ;;  %v3495_v10 = vpack.c.bf16 %v294_v52, %v295_v17  ;;  %2407 = vmatprep.subr.bf16.mxu1 %v2768_v35  ;;  %v333_v16 = vsel %vm331_vm2, %v328_v55, %v329_v58  ;;  %v253_v17 = vsel %vm249_vm1, %v242_v50, %v243_v56  ;;  %v2778_v35 = vld [vmem:[%s4251_s1 + $0x200] ss:$12 sps:$4 sm:$0xff]   ;;  %v2786_v52 = vld [vmem:[%s4251_s1 + $0x2d8] ss:$12 sps:$4 sm:$0xff]  }
  0x67   : > { %1633 = vmatmul.mubr.bf16.gmra.mrb[24].mxu1 %v3254_v53  ;;  %1367 = vmatpush1.bf16.msra.mxu0 %v2738_v62  ;;  %v334_v53 = vsel %vm331_vm2, %v327_v20, %v328_v55  ;;  %v287_v62 = vrot.slane %v3146_v63, 2  ;;  %v244_v20 = vrot.slane %v3146_v63, 1  ;;  %v2752_v63 = vld [vmem:[%s4251_s1 + $0x228] ss:$12 sps:$4 sm:$0xff]   ;;  %v254_v55 = vsel %vm249_vm1, %v241_v45, %v242_v50 }
  0x68   : > { %1307 = vmatprep.mubr.bf16.mxu0 %v269_v9  ;;  %1368 = vmatprep.subr.bf16.mxu0 %v2745_v34  ;;  %v3521_v29 = vpack.c.bf16 %v333_v16, %v334_v53  ;;  %v330_v45 = vrot.slane %v3186_v15, 3  ;;  %v271_v50 = vpack.c.bf16 %v253_v17, %v254_v55  ;;  %v360_v55 = vrot.slane %v3265_v57, 4 }
  0x69   : > { %1640 = vmatprep.mubr.bf16.mxu1 %v269_v9  ;;  %v2769_v9 = vld [vmem:[%s4251_s1 + $0x1e8] ss:$12 sps:$4 sm:$0xff]   ;;  %v293_v34 = vsel %vm290_vm3, %v286_v47, %v287_v62  ;;  %v2777_v47 = vld [vmem:[%s4251_s1 + $0x2c0] ss:$12 sps:$4 sm:$0xff]   ;;  %v252_v53 = vsel %vm249_vm1, %v243_v56, %v244_v20 }
  0x6a   : > { %2408 = vmatpush3.bf16.msra.mxu1 %v2769_v9  ;;  %v332_v16 = vsel %vm331_vm2, %v329_v58, %v330_v45  ;;  %v2756_v56 = vld [vmem:[%s4251_s1 + $0x240] ss:$12 sps:$4 sm:$0xff]   ;;  %v2763_v58 = vld [vmem:[%s4251_s1 + $0x25c] ss:$12 sps:$4 sm:$0xff]  }
  0x6b   : > { %1369 = vmatpush1.bf16.msra.mxu0 %v2743_v13  ;;  %v288_v13 = vrot.slane %v3156_v3, 2  ;;  %2409 = vmatprep.subr.bf16.mxu1 %v2777_v47  ;;  %v2787_v47 = vld [vmem:[%s4251_s1 + $0x218] ss:$12 sps:$4 sm:$0xff]   ;;  %v2781_v3 = vld [vmem:[%s4251_s1 + $0x2bc] ss:$12 sps:$4 sm:$0xff]  }
  0x6c   : > { %1370 = vmatprep.subr.bf16.mxu0 %v2749_v12  ;;  %v289_v12 = vrot.slane %v3186_v15, 2 }
  0x6d   : > { %v292_v9 = vsel %vm290_vm3, %v287_v62, %v288_v13 }
  0x6e   : > { %1308 = vmatmul.mubr.bf16.gmra.mrb[12].mxu0 %v3293_v11  ;;  %2410 = vmatpush3.bf16.msra.mxu1 %v2778_v35  ;;  %v3565_v21 = vpack.c.bf16 %v292_v9, %v293_v34  ;;  %v291_v62 = vsel %vm290_vm3, %v288_v13, %v289_v12  ;;  %v387_v34 = vsel %vm372_vm0, %v356_v26, %v357_v61  ;;  %v361_v35 = vrot.slane %v3306_v23, 4 }
  0x6f   : > { %1641 = vmatmul.mubr.bf16.gmra.mrb[28].mxu1 %v3293_v11  ;;  %1371 = vmatpush1.bf16.msra.mxu0 %v2747_v60  ;;  %v2758_v11 = vld [vmem:[%s4251_s1 + $0x244] ss:$12 sps:$4 sm:$0xff]   ;;  %v347_v60 = vsel %vm331_vm2, %v330_v45, %v315_v37  ;;  %v306_v37 = vsel %vm290_vm3, %v289_v12, %v274_v7  ;;  %v362_v7 = vrot.slane %v3327_v43, 4  ;;  %v251_v26 = vsel %vm249_vm1, %v244_v20, %v245_v28 }
  0x70   : > { %1317 = vmatprep.mubr.bf16.mxu0 %v270_v8  ;;  %1372 = vmatprep.subr.bf16.mxu0 %v2754_v1  ;;  %v358_v1 = vrot.slane %v3233_v41, 4  ;;  %v3587_v17 = vpack.c.bf16 %v306_v37, %v291_v62  ;;  %v2791_v41 = vld [vmem:[%s4251_s1 + $0x2f0] ss:$12 sps:$4 sm:$0xff]   ;;  %v363_v23 = vrot.slane %v3367_v14, 4  ;;  %v2767_v14 = vld [vmem:[%s4251_s1 + $0x274] ss:$12 sps:$4 sm:$0xff]   ;;  %v383_v13 = vsel %vm372_vm0, %v360_v55, %v361_v35 }
  0x71   : > { %1648 = vmatprep.mubr.bf16.mxu1 %v270_v8  ;;  %2411 = vmatprep.subr.bf16.mxu1 %v2786_v52  ;;  %v3567_v8 = vpack.c.bf16 %v347_v60, %v332_v16  ;;  %v382_v52 = vsel %vm372_vm0, %v361_v35, %v362_v7  ;;  %v2792_v12 = vld [vmem:[%s4251_s1 + $0x230] ss:$12 sps:$4 sm:$0xff]   ;;  %v272_v16 = vpack.c.bf16 %v251_v26, %v252_v53  ;;  %v246_v60 = vrot.slane %v3186_v15, 1  ;;  %v2770_v53 = vld [vmem:[%s4251_s1 + $0x288] ss:$12 sps:$4 sm:$0xff]  }
  0x72   : > { %v380_v45 = vsel %vm372_vm0, %v363_v23, %v364_v38  ;;  %2412 = vmatpush3.bf16.msra.mxu1 %v2787_v47  ;;  %v2772_v38 = vld [vmem:[%s4251_s1 + $0x28c] ss:$12 sps:$4 sm:$0xff]   ;;  %v2776_v15 = vld [vmem:[%s4251_s1 + $0x2a4] ss:$12 sps:$4 sm:$0xff]   ;;  %v2813_v47 = vld [vmem:[%s4251_s1 + $0x334] ss:$12 sps:$4 sm:$0xff]  }
  0x73   : > { %1373 = vmatpush1.bf16.msra.mxu0 %v2752_v63  ;;  %v359_v63 = vrot.slane %v3257_v54, 4  ;;  %v386_v54 = vsel %vm372_vm0, %v357_v61, %v358_v1  ;;  %v381_v61 = vsel %vm372_vm0, %v362_v7, %v363_v23  ;;  %2413 = vmatprep.subr.bf16.mxu1 %v2791_v41  ;;  %v250_v62 = vsel %vm249_vm1, %v245_v28, %v246_v60  ;;  %v2783_v28 = vld [vmem:[%s4251_s1 + $0x2d0] ss:$12 sps:$4 sm:$0xff]   ;;  %v2815_v7 = vld [vmem:[%s4251_s1 + $0x34c] ss:$12 sps:$4 sm:$0xff]  }
  0x74   : > { %1374 = vmatprep.subr.bf16.mxu0 %v2758_v11  ;;  %v3609_v43 = vpack.c.bf16 %v386_v54, %v387_v34  ;;  %v3633_v9 = vpack.c.bf16 %v380_v45, %v381_v61  ;;  %v2809_v34 = vld [vmem:[%s4251_s1 + $0x304] ss:$12 sps:$4 sm:$0xff]   ;;  %v2798_v41 = vld [vmem:[%s4251_s1 + $0x380] ss:$12 sps:$4 sm:$0xff]  }
  0x75   : > { %v385_v57 = vsel %vm372_vm0, %v358_v1, %v359_v63  ;;  %v384_v20 = vsel %vm372_vm0, %v359_v63, %v360_v55  ;;  %v2788_v1 = vld [vmem:[%s4251_s1 + $0x2e8] ss:$12 sps:$4 sm:$0xff]   ;;  %v2810_v63 = vld [vmem:[%s4251_s1 + $0x300] ss:$12 sps:$4 sm:$0xff]   ;;  %v2796_v55 = vld [vmem:[%s4251_s1 + $0x350] ss:$12 sps:$4 sm:$0xff]  }
  0x76   : > { %1318 = vmatmul.mubr.bf16.gmra.mrb[16].mxu0 %v3058_v30  ;;  %v3618_v11 = vpack.c.bf16 %v384_v20, %v385_v57  ;;  %2414 = vmatpush3.bf16.msra.mxu1 %v2792_v12  ;;  %v2814_v35 = vld [vmem:[%s4251_s1 + $0x330] ss:$12 sps:$4 sm:$0xff]   ;;  %v2818_v54 = vld [vmem:[%s4251_s1 + $0x360] ss:$12 sps:$4 sm:$0xff]  }
  0x77   : > { %1649 = vmatmul.mubr.bf16.gmra.mrb[32].mxu1 %v3058_v30  ;;  %1375 = vmatpush1.bf16.msra.mxu0 %v2756_v56  ;;  %v2761_v30 = vld [vmem:[%s4251_s1 + $0x258] ss:$12 sps:$4 sm:$0xff]   ;;  %v2793_v56 = vld [vmem:[%s4251_s1 + $0x308] ss:$12 sps:$4 sm:$0xff]   ;;  %v2822_v20 = vld [vmem:[%s4251_s1 + $0x390] ss:$12 sps:$4 sm:$0xff]  }
  0x78   : > { %1327 = vmatprep.mubr.bf16.mxu0 %v271_v50  ;;  %1376 = vmatprep.subr.bf16.mxu0 %v2763_v58  ;;  %v2774_v58 = vld [vmem:[%s4251_s1 + $0x2a0] ss:$12 sps:$4 sm:$0xff]   ;;  %v2817_v26 = vld [vmem:[%s4251_s1 + $0x364] ss:$12 sps:$4 sm:$0xff]   ;;  %v2819_v57 = vld [vmem:[%s4251_s1 + $0x37c] ss:$12 sps:$4 sm:$0xff]  }
  0x79   : > { %1656 = vmatprep.mubr.bf16.mxu1 %v271_v50  ;;  %v3629_v50 = vpack.c.bf16 %v382_v52, %v383_v13  ;;  %2479 = vmatprep.subr.bf16.mxu1 %v2793_v56  ;;  %v2821_v23 = vld [vmem:[%s4251_s1 + $0x394] ss:$12 sps:$4 sm:$0xff]   ;;  %v2823_v52 = vld [vmem:[%s4251_s1 + $0x3ac] ss:$12 sps:$4 sm:$0xff]   ;;  %v3853_v13 = vadd.s32 96, %v3035_v24 }
  0x7b   : > { %1377 = vmatpush1.bf16.msra.mxu0 %v2761_v30  ;;  %v2800_v30 = vld [vmem:[%s4251_s1 + $0x3b0] ss:$12 sps:$4 sm:$0xff]  }
  0x7c   : > { %1378 = vmatprep.subr.bf16.mxu0 %v2767_v14 }
  0x7e   : > { %1328 = vmatmul.mubr.bf16.gmra.mrb[20].mxu0 %v3061_v31 }
  0x7f   : > { %1657 = vmatmul.mubr.bf16.gmra.mrb[36].mxu1 %v3061_v31  ;;  %1379 = vmatpush1.bf16.msra.mxu0 %v2765_v33  ;;  %v265_v31 = vsel %vm249_vm1, %v246_v60, %v231_v32  ;;  %v2785_v32 = vld [vmem:[%s4251_s1 + $0x2d4] ss:$12 sps:$4 sm:$0xff]   ;;  %v3871_v33 = vadd.s32 112, %v3035_v24  ;;  %v3880_v60 = vadd.s32 120, %v3035_v24 }
  0x80   : > { %1337 = vmatprep.mubr.bf16.mxu0 %v272_v16  ;;  %1380 = vmatprep.subr.bf16.mxu0 %v2772_v38  ;;  %v273_v37 = vpack.c.bf16 %v265_v31, %v250_v62 }
  0x81   : > { %1664 = vmatprep.mubr.bf16.mxu1 %v272_v16 }
  0x83   : > { %1381 = vmatpush1.bf16.msra.mxu0 %v2770_v53 }
  0x84   : > { %1382 = vmatprep.subr.bf16.mxu0 %v2776_v15  ;;  %v3887_v15 = vadd.s32 8, %v3035_v24 }
  0x86   : > { %1338 = vmatmul.mubr.bf16.gmra.mrb[24].mxu0 %v3107_v48 }
  0x87   : > { %1665 = vmatmul.mubr.bf16.gmra.mrb[40].mxu1 %v3107_v48  ;;  %1383 = vmatpush1.bf16.msra.mxu0 %v2774_v58  ;;  %v2790_v48 = vld [vmem:[%s4251_s1 + $0x2ec] ss:$12 sps:$4 sm:$0xff]  }
  0x88   : > { %1347 = vmatprep.mubr.bf16.mxu0 %v273_v37  ;;  %1384 = vmatprep.subr.bf16.mxu0 %v2781_v3 }
  0x89   : > { %1672 = vmatprep.mubr.bf16.mxu1 %v273_v37 }
  0x8b   : > { %1385 = vmatpush1.bf16.msra.mxu0 %v2779_v18  ;;  %v3894_v18 = vadd.s32 16, %v3035_v24 }
  0x8c   : > { %1386 = vmatprep.subr.bf16.mxu0 %v2785_v32 }
  0x8e   : > { %1348 = vmatmul.mubr.bf16.gmra.mrb[28].mxu0 %v3149_v0 }
  0x8f   : > { %1673 = vmatmul.mubr.bf16.gmra.mrb[44].mxu1 %v3149_v0  ;;  %1387 = vmatpush1.bf16.msra.mxu0 %v2783_v28  ;;  %v2794_v0 = vld [vmem:[%s4251_s1 + $0x320] ss:$12 sps:$4 sm:$0xff]   ;;  %v3897_v28 = vadd.s32 24, %v3035_v24 }
  0x90   : > { %1390 = vmatprep.mubr.bf16.mxu0 %v3283_v6  ;;  %1388 = vmatprep.subr.bf16.mxu0 %v2790_v48 }
  0x91   : > { %1713 = vmatprep.mubr.bf16.mxu1 %v3283_v6  ;;  %v2811_v6 = vld [vmem:[%s4251_s1 + $0x31c] ss:$12 sps:$4 sm:$0xff]  }
  0x93   : > { %1389 = vmatpush1.bf16.msra.mxu0 %v2788_v1 }
  0x94   : > { %1471 = vmatprep.subr.bf16.mxu0 %v2809_v34 }
  0x96   : > { %1391 = vmatmul.mubr.bf16.vlgmr.msra.gmra.mrb[0].mxu0 %v3329_v44 }
  0x97   : > { %1714 = vmatmul.mubr.bf16.vlgmr.msra.gmra.mrb[48].mxu1 %v3329_v44  ;;  %1472 = vmatpush1.bf16.msra.mxu0 %v2810_v63  ;;  %v2812_v44 = vld [vmem:[%s4251_s1 + $0x318] ss:$12 sps:$4 sm:$0xff]  }
  0x98   : > { %1400 = vmatprep.mubr.bf16.mxu0 %v3349_v5  ;;  %1721 = vmatprep.mubr.bf16.mxu1 %v3349_v5  ;;  %v2795_v5 = vld [vmem:[%s4251_s1 + $0x338] ss:$12 sps:$4 sm:$0xff]  }
  0x99   : > { %1473 = vmatprep.subr.bf16.mxu0 %v2811_v6  ;;  %2480 = vmatpush3.bf16.msra.mxu1 %v2793_v56  ;;  %v3906_v6 = vadd.s32 32, %v3035_v24 }
  0x9a   : > { %2481 = vmatprep.subr.bf16.mxu1 %v2794_v0 }
  0x9b   : > { %1474 = vmatpush1.bf16.msra.mxu0 %v2812_v44  ;;  %4267 = vst [vmem:[#allocation5_spill] sm:$0xff] %v3906_v6 }
  0x9c   : > { %1475 = vmatprep.subr.bf16.mxu0 %v2813_v47 }
  0x9d   : > { %2482 = vmatpush3.bf16.msra.mxu1 %v2794_v0 }
  0x9e   : > { %1401 = vmatmul.mubr.bf16.gmra.mrb[4].mxu0 %v3381_v40  ;;  %2483 = vmatprep.subr.bf16.mxu1 %v2795_v5 }
  0x9f   : > { %1722 = vmatmul.mubr.bf16.gmra.mrb[52].mxu1 %v3381_v40  ;;  %1410 = vmatprep.mubr.bf16.mxu0 %v3388_v51  ;;  %v2816_v40 = vld [vmem:[%s4251_s1 + $0x348] ss:$12 sps:$4 sm:$0xff]  }
  0xa0   : > { %1729 = vmatprep.mubr.bf16.mxu1 %v3388_v51  ;;  %1476 = vmatpush1.bf16.msra.mxu0 %v2814_v35  ;;  %v2797_v51 = vld [vmem:[%s4251_s1 + $0x368] ss:$12 sps:$4 sm:$0xff]  }
  0xa1   : > { %1477 = vmatprep.subr.bf16.mxu0 %v2815_v7  ;;  %2484 = vmatpush3.bf16.msra.mxu1 %v2795_v5  ;;  %v3911_v5 = vadd.s32 40, %v3035_v24 }
  0xa2   : > { %2485 = vmatprep.subr.bf16.mxu1 %v2796_v55 }
  0xa3   : > { %4268 = vst [vmem:[#allocation6_spill] sm:$0xff] %v3911_v5 }
  0xa4   : > { %1478 = vmatpush1.bf16.msra.mxu0 %v2816_v40 }
  0xa5   : > { %1479 = vmatprep.subr.bf16.mxu0 %v2817_v26  ;;  %2486 = vmatpush3.bf16.msra.mxu1 %v2796_v55 }
  0xa6   : > { %1411 = vmatmul.mubr.bf16.gmra.mrb[8].mxu0 %v3412_v27  ;;  %2487 = vmatprep.subr.bf16.mxu1 %v2797_v51 }
  0xa7   : > { %1730 = vmatmul.mubr.bf16.gmra.mrb[56].mxu1 %v3412_v27  ;;  %1420 = vmatprep.mubr.bf16.mxu0 %v3414_v36  ;;  %v2820_v27 = vld [vmem:[%s4251_s1 + $0x378] ss:$12 sps:$4 sm:$0xff]  }
  0xa8   : > { %1737 = vmatprep.mubr.bf16.mxu1 %v3414_v36  ;;  %1480 = vmatpush1.bf16.msra.mxu0 %v2818_v54  ;;  %v2799_v36 = vld [vmem:[%s4251_s1 + $0x398] ss:$12 sps:$4 sm:$0xff]   ;;  %v3921_v54 = vadd.s32 56, %v3035_v24 }
  0xa9   : > { %1481 = vmatprep.subr.bf16.mxu0 %v2819_v57  ;;  %2488 = vmatpush3.bf16.msra.mxu1 %v2797_v51  ;;  %v3916_v51 = vadd.s32 48, %v3035_v24 }
  0xaa   : > { %2489 = vmatprep.subr.bf16.mxu1 %v2798_v41  ;;  %4270 = vst [vmem:[#allocation8_spill] sm:$0xff] %v3921_v54 }
  0xab   : > { %4269 = vst [vmem:[#allocation7_spill] sm:$0xff] %v3916_v51 }
  0xac   : > { %1482 = vmatpush1.bf16.msra.mxu0 %v2820_v27 }
  0xad   : > { %1483 = vmatprep.subr.bf16.mxu0 %v2821_v23  ;;  %2490 = vmatpush3.bf16.msra.mxu1 %v2798_v41 }
  0xae   : > { %1421 = vmatmul.mubr.bf16.gmra.mrb[12].mxu0 %v3425_v42  ;;  %2491 = vmatprep.subr.bf16.mxu1 %v2799_v36 }
  0xaf   : > { %1738 = vmatmul.mubr.bf16.gmra.mrb[60].mxu1 %v3425_v42  ;;  %1430 = vmatprep.mubr.bf16.mxu0 %v3452_v39  ;;  %v2824_v42 = vld [vmem:[%s4251_s1 + $0x3a8] ss:$12 sps:$4 sm:$0xff]  }
  0xb0   : > { %1745 = vmatprep.mubr.bf16.mxu1 %v3452_v39  ;;  %1484 = vmatpush1.bf16.msra.mxu0 %v2822_v20  ;;  %v4256_v39 = vsub.s32 0, %v3035_v24 }
  0xb1   : > { %1485 = vmatprep.subr.bf16.mxu0 %v2823_v52  ;;  %2492 = vmatpush3.bf16.msra.mxu1 %v2799_v36 }
  0xb2   : > { %2493 = vmatprep.subr.bf16.mxu1 %v2800_v30 }
  0xb4   : > { %1486 = vmatpush1.bf16.msra.mxu0 %v2824_v42 }
  0xb5   : > { %2494 = vmatpush3.bf16.msra.mxu1 %v2800_v30 }
  0xb6   : > { %1431 = vmatmul.mubr.bf16.gmra.mrb[16].mxu0 %v3464_v25 }
  0xb7   : > { %1746 = vmatmul.mubr.bf16.gmra.mrb[64].mxu1 %v3464_v25  ;;  %1440 = vmatprep.mubr.bf16.mxu0 %v3488_v46  ;;  %v3807_v25 = vld [vmem:[%s4253_s3] sm:$0x7] }
  0xb8   : > { %1753 = vmatprep.mubr.bf16.mxu1 %v3488_v46  ;;  %v3812_v46 = vadd.s32 64, %v3035_v24 }
  0xbe   : > { %1441 = vmatmul.mubr.bf16.gmra.mrb[20].mxu0 %v3495_v10 }
  0xbf   : > { %1754 = vmatmul.mubr.bf16.gmra.mrb[68].mxu1 %v3495_v10  ;;  %1450 = vmatprep.mubr.bf16.mxu0 %v3521_v29 }
  0xc0   : > { %1761 = vmatprep.mubr.bf16.mxu1 %v3521_v29 }
  0xc6   : > { %1451 = vmatmul.mubr.bf16.gmra.mrb[24].mxu0 %v3565_v21 }
  0xc7   : > { %1762 = vmatmul.mubr.bf16.gmra.mrb[72].mxu1 %v3565_v21  ;;  %1460 = vmatprep.mubr.bf16.mxu0 %v3567_v8  ;;  %v3835_v21 = vadd.s32 80, %v3035_v24 }
  0xc8   : > { %1769 = vmatprep.mubr.bf16.mxu1 %v3567_v8 }
  0xce   : > { %1461 = vmatmul.mubr.bf16.gmra.mrb[28].mxu0 %v3587_v17 }
  0xcf   : > { %1770 = vmatmul.mubr.bf16.gmra.mrb[76].mxu1 %v3587_v17  ;;  %1503 = vmatprep.mubr.bf16.mxu0 %v2889_v2 }
  0xd0   : > { %2495 = vmatprep.mubr.bf16.mxu1 %v3609_v43 }
  0xd6   : > { %1504 = vmatmul.mubr.bf16.vlgmr.msra.gmra.mrb[0].mxu0 %v3609_v43  ;;  %v3844_v43 = vadd.s32 88, %v3035_v24 }
  0xd7   : > { %2496 = vmatmul.mubr.bf16.vlgmr.msra.gmra.mrb[80].mxu1 %v3618_v11  ;;  %1513 = vmatprep.mubr.bf16.mxu0 %v2889_v2 }
  0xd8   : > { %2499 = vmatprep.mubr.bf16.mxu1 %v3629_v50 }
  0xde   : > { %1514 = vmatmul.mubr.bf16.gmra.mrb[4].mxu0 %v3618_v11 }
  0xdf   : > { %2500 = vmatmul.mubr.bf16.gmra.mrb[84].mxu1 %v3633_v9  ;;  %1523 = vmatprep.mubr.bf16.mxu0 %v2889_v2 }
  0xe0   : > { %2503 = vmatprep.mubr.bf16.mxu1 %v3109_v49 }
  0xe6   : > { %1524 = vmatmul.mubr.bf16.gmra.mrb[8].mxu0 %v3629_v50  ;;  %v3862_v50 = vadd.s32 104, %v3035_v24 }
  0xe7   : > { %2504 = vmatmul.mubr.bf16.gmra.mrb[88].mxu1 %v3158_v4  ;;  %1533 = vmatprep.mubr.bf16.mxu0 %v2889_v2  ;;  %v3817_v2 = vrot.slane %v3807_v25, %v4256_v39 }
  0xe8   : > { %2507 = vmatprep.mubr.bf16.mxu1 %v3205_v22 }
  0xe9   : > { %vm1927_vm4 = vcmp.lt.s32.totalorder %v3812_v46, %v3817_v2  ;;  %vm1933_vm6 = vcmp.lt.s32.totalorder %v3835_v21, %v3817_v2  ;;  %vm1936_vm7 = vcmp.lt.s32.totalorder %v3844_v43, %v3817_v2  ;;  %vm1939_vm8 = vcmp.lt.s32.totalorder %v3853_v13, %v3817_v2 }
  0xea   : > { %vm1942_vm9 = vcmp.lt.s32.totalorder %v3862_v50, %v3817_v2  ;;  %vm1945_vm10 = vcmp.lt.s32.totalorder %v3871_v33, %v3817_v2  ;;  %vm1948_vm11 = vcmp.lt.s32.totalorder %v3880_v60, %v3817_v2  ;;  %vm1906_vm12 = vcmp.lt.s32.totalorder %v3887_v15, %v3817_v2 }
  0xeb   : > { %vm1909_vm13 = vcmp.lt.s32.totalorder %v3894_v18, %v3817_v2  ;;  %vm1912_vm14 = vcmp.lt.s32.totalorder %v3897_v28, %v3817_v2  ;;  %vm1915_vm15 = vcmp.lt.s32.totalorder %v3906_v6, %v3817_v2  ;;  %vm1918_vm0 = vcmp.lt.s32.totalorder %v3911_v5, %v3817_v2 }
  0xec   : > { %vm1921_vm1 = vcmp.lt.s32.totalorder %v3916_v51, %v3817_v2 }
  0xee   : > { %1534 = vmatmul.mubr.bf16.gmra.mrb[12].mxu0 %v3633_v9 }
  0xef   : > { %2508 = vmatmul.mubr.bf16.gmra.mrb[92].mxu1 %v3271_v59  ;;  %v3826_v59 = vadd.s32 72, %v3035_v24 }
  0xf1   : > { %vm1930_vm5 = vcmp.lt.s32.totalorder %v3826_v59, %v3817_v2 }
 0x10a   : > { %v3809_v49 = vpop.f32.mrb[0].mxu1 }
 0x10b   : > { %v3819_v4 = vpop.f32.mrb[1].mxu1 }
 0x10c   : > { %v3821_v22 = vpop.f32.mrb[2].mxu1 }
 0x10d   : > { %v3828_v10 = vpop.f32.mrb[3].mxu1 }
 0x112   : > { %v3832_v29 = vpop.f32.mrb[4].mxu1 }
 0x113   : > { %v3837_v8 = vpop.f32.mrb[5].mxu1 }
 0x114   : > { %v3839_v17 = vpop.f32.mrb[6].mxu1 }
 0x115   : > { %v3846_v14 = vpop.f32.mrb[7].mxu1 }
 0x11a   : > { %v3850_v11 = vpop.f32.mrb[8].mxu1 }
 0x11b   : > { %v3855_v45 = vpop.f32.mrb[9].mxu1 }
 0x11c   : > { %v3857_v12 = vpop.f32.mrb[10].mxu1 }
 0x11d   : > { %v3864_v61 = vpop.f32.mrb[11].mxu1 }
 0x122   : > { %v3868_v9 = vpop.f32.mrb[12].mxu1 }
 0x123   : > { %v3873_v16 = vpop.f32.mrb[13].mxu1 }
 0x124   : > { %v3875_v38 = vpop.f32.mrb[14].mxu1 }
 0x125   : > { %v3882_v56 = vpop.f32.mrb[15].mxu1 }
 0x12a   : > { %v2351_v53 = vpop.f32.mrb[16].mxu1 }
 0x12b   : > { %v2352_v62 = vpop.f32.mrb[17].mxu1 }
 0x12c   : > { %v3889_v31 = vadd.f32 %v2352_v62, %v2351_v53  ;;  %v2354_v58 = vpop.f32.mrb[18].mxu1 }
 0x12d   : > { %v2355_v37 = vpop.f32.mrb[19].mxu1 }
 0x12e   : > { %v2356_v3 = vadd.f32 %v2355_v37, %v2354_v58 }
 0x132   : > { %v2357_v32 = vpop.f32.mrb[20].mxu1 }
 0x133   : > { %v2358_v48 = vpop.f32.mrb[21].mxu1 }
 0x134   : > { %v3901_v1 = vadd.f32 %v2358_v48, %v2357_v32  ;;  %v2360_v34 = vpop.f32.mrb[22].mxu1 }
 0x135   : > { %v2361_v0 = vpop.f32.mrb[23].mxu1 }
 0x136   : > { %v2362_v63 = vadd.f32 %v2361_v0, %v2360_v34 }
 0x13a   : > { %v2363_v44 = vpop.f32.mrb[24].mxu1 }
 0x13b   : > { %v2364_v47 = vpop.f32.mrb[25].mxu1 }
 0x13c   : > { %v2365_v55 = vadd.f32 %v2364_v47, %v2363_v44  ;;  %v2366_v35 = vpop.f32.mrb[26].mxu1 }
 0x13d   : > { %v2367_v7 = vpop.f32.mrb[27].mxu1 }
 0x13e   : > { %v2368_v40 = vadd.f32 %v2367_v7, %v2366_v35 }
 0x142   : > { %v2369_v26 = vpop.f32.mrb[28].mxu1 }
 0x143   : > { %v2370_v41 = vpop.f32.mrb[29].mxu1 }
 0x144   : > { %v2371_v57 = vadd.f32 %v2370_v41, %v2369_v26  ;;  %v2372_v27 = vpop.f32.mrb[30].mxu1 }
 0x145   : > { %v2373_v36 = vpop.f32.mrb[31].mxu1 }
 0x146   : > { %v2374_v23 = vadd.f32 %v2373_v36, %v2372_v27 }
 0x14a   : > { %v2375_v30 = vpop.f32.mrb[32].mxu1 }
 0x14b   : > { %v2376_v20 = vpop.f32.mrb[33].mxu1 }
 0x14c   : > { %v3925_v52 = vadd.f32 %v2376_v20, %v2375_v30  ;;  %v2378_v42 = vpop.f32.mrb[34].mxu1 }
 0x14d   : > { %v2379_v53 = vpop.f32.mrb[35].mxu1 }
 0x14e   : > { %v3927_v62 = vadd.f32 %v2379_v53, %v2378_v42 }
 0x152   : > { %v2381_v58 = vpop.f32.mrb[36].mxu1 }
 0x153   : > { %v2382_v37 = vpop.f32.mrb[37].mxu1 }
 0x154   : > { %v3929_v32 = vadd.f32 %v2382_v37, %v2381_v58  ;;  %v2384_v48 = vpop.f32.mrb[38].mxu1 }
 0x155   : > { %v2385_v34 = vpop.f32.mrb[39].mxu1 }
 0x156   : > { %v3931_v0 = vadd.f32 %v2385_v34, %v2384_v48 }
 0x15a   : > { %v2387_v44 = vpop.f32.mrb[40].mxu1 }
 0x15b   : > { %v2388_v47 = vpop.f32.mrb[41].mxu1 }
 0x15c   : > { %v3933_v35 = vadd.f32 %v2388_v47, %v2387_v44  ;;  %v2390_v7 = vpop.f32.mrb[42].mxu1 }
 0x15d   : > { %v2391_v26 = vpop.f32.mrb[43].mxu1 }
 0x15e   : > { %v3935_v41 = vadd.f32 %v2391_v26, %v2390_v7 }
 0x162   : > { %v2393_v27 = vpop.f32.mrb[44].mxu1 }
 0x163   : > { %v2394_v36 = vpop.f32.mrb[45].mxu1 }
 0x164   : > { %v3937_v30 = vadd.f32 %v2394_v36, %v2393_v27  ;;  %v2396_v20 = vpop.f32.mrb[46].mxu1 }
 0x165   : > { %v2397_v42 = vpop.f32.mrb[47].mxu1 }
 0x166   : > { %v3939_v53 = vadd.f32 %v2397_v42, %v2396_v20 }
 0x16a   : > { %v2415_v58 = vpop.f32.mrb[48].mxu1 }
 0x16b   : > { %v2416_v37 = vpop.f32.mrb[49].mxu1 }
 0x16c   : > { %v2417_v48 = vadd.f32 %v2416_v37, %v2415_v58  ;;  %v2418_v34 = vpop.f32.mrb[50].mxu1 }
 0x16d   : > { %v2419_v19 = vpop.f32.mrb[51].mxu1 }
 0x16e   : > { %v2420_v39 = vadd.f32 %v2419_v19, %v2418_v34  ;;  %v3942_v44 = vadd.f32 %v2417_v48, %v3889_v31 }
 0x170   : > { %v3944_v47 = vadd.f32 %v2420_v39, %v2356_v3 }
 0x172   : > { %v2421_v7 = vpop.f32.mrb[52].mxu1 }
 0x173   : > { %v2422_v26 = vpop.f32.mrb[53].mxu1 }
 0x174   : > { %v2423_v54 = vadd.f32 %v2422_v26, %v2421_v7  ;;  %v2424_v27 = vpop.f32.mrb[54].mxu1 }
 0x175   : > { %v2425_v36 = vpop.f32.mrb[55].mxu1 }
 0x176   : > { %v2426_v5 = vadd.f32 %v2425_v36, %v2424_v27  ;;  %v3947_v20 = vadd.f32 %v2423_v54, %v3901_v1  ;;  %v1897_v1 = vsub.s32 1, %v3035_v24 }
 0x178   : > { %v3949_v42 = vadd.f32 %v2426_v5, %v2362_v63  ;;  %v3963_v36 = vrot.slane %v3807_v25, %v1897_v1 }
 0x17a   : > { %v2427_v58 = vpop.f32.mrb[56].mxu1  ;;  %vm1928_vm3 = vcmp.lt.s32.totalorder %v3812_v46, %v3963_v36  ;;  %vm1931_vm2 = vcmp.lt.s32.totalorder %v3826_v59, %v3963_v36 }
 0x17b   : > { %v2428_v37 = vpop.f32.mrb[57].mxu1 }
 0x17c   : > { %v2429_v6 = vadd.f32 %v2428_v37, %v2427_v58  ;;  %v2430_v19 = vpop.f32.mrb[58].mxu1 }
 0x17d   : > { %v2431_v34 = vpop.f32.mrb[59].mxu1 }
 0x17e   : > { %v2432_v31 = vadd.f32 %v2431_v34, %v2430_v19  ;;  %v3951_v48 = vadd.f32 %v2429_v6, %v2365_v55 }
 0x180   : > { %v3953_v39 = vadd.f32 %v2432_v31, %v2368_v40 }
 0x182   : > { %v2433_v3 = vpop.f32.mrb[60].mxu1 }
 0x183   : > { %v2434_v7 = vpop.f32.mrb[61].mxu1 }
 0x184   : > { %v2435_v26 = vadd.f32 %v2434_v7, %v2433_v3  ;;  %v2436_v51 = vpop.f32.mrb[62].mxu1 }
 0x185   : > { %v2437_v27 = vpop.f32.mrb[63].mxu1 }
 0x186   : > { %v2438_v54 = vadd.f32 %v2437_v27, %v2436_v51  ;;  %v3956_v63 = vadd.f32 %v2435_v26, %v2371_v57 }
 0x188   : > { %v3958_v5 = vadd.f32 %v2438_v54, %v2374_v23 }
 0x189   : > { %v1432_v6 = vpop.f32.mrb[16].mxu0 }
 0x18a   : > { %v2439_v55 = vpop.f32.mrb[64].mxu1  ;;  %v2527_v40 = vadd.f32 %v3809_v49, %v1432_v6  ;;  %v1434_v58 = vpop.f32.mrb[17].mxu0 }
 0x18b   : > { %v2440_v37 = vpop.f32.mrb[65].mxu1  ;;  %v2528_v19 = vadd.f32 %v3819_v4, %v1434_v58  ;;  %v1436_v31 = vpop.f32.mrb[18].mxu0 }
 0x18c   : > { %v2441_v34 = vadd.f32 %v2440_v37, %v2439_v55  ;;  %v2442_v51 = vpop.f32.mrb[66].mxu1  ;;  %v1975_v57 = vsel %vm1927_vm4, %v2527_v40, -inf  ;;  %v2529_v23 = vadd.f32 %v3821_v22, %v1436_v31  ;;  %v1438_v3 = vpop.f32.mrb[19].mxu0  ;;  %vm1934_vm4 = vcmp.lt.s32.totalorder %v3835_v21, %v3963_v36 }
 0x18d   : > { %v2443_v49 = vpop.f32.mrb[67].mxu1  ;;  %v2530_v7 = vadd.f32 %v3828_v10, %v1438_v3  ;;  %v1976_v54 = vsel %vm1928_vm3, %v2528_v19, -inf }
 0x18e   : > { %v2444_v4 = vadd.f32 %v2443_v49, %v2442_v51  ;;  %v3977_v26 = vadd.f32 %v2441_v34, %v3925_v52  ;;  %v1978_v27 = vsel %vm1930_vm5, %v2529_v23, -inf  ;;  %vm1937_vm5 = vcmp.lt.s32.totalorder %v3844_v43, %v3963_v36 }
 0x18f   : > { %v2005_v6 = vmax.f32 %v1978_v27, %v1975_v57  ;;  %v1979_v55 = vsel %vm1931_vm2, %v2530_v7, -inf }
 0x190   : > { %v3983_v22 = vadd.f32 %v2444_v4, %v3927_v62  ;;  %v2026_v40 = vmax.f32 %v1979_v55, %v1976_v54 }
 0x191   : > { %v1442_v58 = vpop.f32.mrb[20].mxu0 }
 0x192   : > { %v2445_v37 = vpop.f32.mrb[68].mxu1  ;;  %v2531_v31 = vadd.f32 %v3832_v29, %v1442_v58  ;;  %v1444_v10 = vpop.f32.mrb[21].mxu0 }
 0x193   : > { %v2446_v52 = vpop.f32.mrb[69].mxu1  ;;  %v2532_v34 = vadd.f32 %v3837_v8, %v1444_v10  ;;  %v1446_v23 = vpop.f32.mrb[22].mxu0 }
 0x194   : > { %v2447_v51 = vadd.f32 %v2446_v52, %v2445_v37  ;;  %v2448_v19 = vpop.f32.mrb[70].mxu1  ;;  %v1981_v62 = vsel %vm1933_vm6, %v2531_v31, -inf  ;;  %v2533_v57 = vadd.f32 %v3839_v17, %v1446_v23  ;;  %v1448_v3 = vpop.f32.mrb[23].mxu0  ;;  %vm1940_vm6 = vcmp.lt.s32.totalorder %v3853_v13, %v3963_v36 }
 0x195   : > { %v2449_v29 = vpop.f32.mrb[71].mxu1  ;;  %v2007_v49 = vmax.f32 %v2005_v6, %v1981_v62  ;;  %v1982_v7 = vsel %vm1934_vm4, %v2532_v34, -inf  ;;  %v2534_v4 = vadd.f32 %v3846_v14, %v1448_v3 }
 0x196   : > { %v2450_v27 = vadd.f32 %v2449_v29, %v2448_v19  ;;  %v2028_v8 = vmax.f32 %v2026_v40, %v1982_v7  ;;  %v1984_v54 = vsel %vm1936_vm7, %v2533_v57, -inf  ;;  %v4000_v55 = vadd.f32 %v2447_v51, %v3929_v32 }
 0x197   : > { %v2009_v58 = vmax.f32 %v2007_v49, %v1984_v54  ;;  %v1985_v17 = vsel %vm1937_vm5, %v2534_v4, -inf  ;;  %vm1943_vm7 = vcmp.lt.s32.totalorder %v3862_v50, %v3963_v36  ;;  %vm1904_vm5 = vcmp.lt.s32.totalorder %v3035_v24, %v3963_v36 }
 0x198   : > { %v4003_v37 = vadd.f32 %v2450_v27, %v3931_v0  ;;  %v2030_v31 = vmax.f32 %v2028_v8, %v1985_v17 }
 0x199   : > { %v1452_v10 = vpop.f32.mrb[24].mxu0 }
 0x19a   : > { %v2451_v6 = vpop.f32.mrb[72].mxu1  ;;  %v2535_v52 = vadd.f32 %v3850_v11, %v1452_v10  ;;  %v1454_v14 = vpop.f32.mrb[25].mxu0 }
 0x19b   : > { %v2452_v40 = vpop.f32.mrb[73].mxu1  ;;  %v2536_v34 = vadd.f32 %v3855_v45, %v1454_v14  ;;  %v1456_v32 = vpop.f32.mrb[26].mxu0 }
 0x19c   : > { %v2453_v23 = vadd.f32 %v2452_v40, %v2451_v6  ;;  %v2454_v51 = vpop.f32.mrb[74].mxu1  ;;  %v1987_v0 = vsel %vm1939_vm8, %v2535_v52, -inf  ;;  %v2537_v19 = vadd.f32 %v3857_v12, %v1456_v32  ;;  %v1458_v62 = vpop.f32.mrb[27].mxu0  ;;  %vm1946_vm8 = vcmp.lt.s32.totalorder %v3871_v33, %v3963_v36 }
 0x19d   : > { %v2455_v11 = vpop.f32.mrb[75].mxu1  ;;  %v2011_v57 = vmax.f32 %v2009_v58, %v1987_v0  ;;  %v1988_v3 = vsel %vm1940_vm6, %v2536_v34, -inf  ;;  %v2538_v29 = vadd.f32 %v3864_v61, %v1458_v62  ;;  %v1901_v58 = vsub.s32 2, %v3035_v24 }
 0x19e   : > { %v2456_v49 = vadd.f32 %v2455_v11, %v2454_v51  ;;  %v2032_v45 = vmax.f32 %v2030_v31, %v1988_v3  ;;  %v1990_v7 = vsel %vm1942_vm9, %v2537_v19, -inf  ;;  %v4020_v4 = vadd.f32 %v2453_v23, %v3933_v35 }
 0x19f   : > { %v2006_v27 = vmax.f32 %v1990_v7, %v2011_v57  ;;  %v1991_v12 = vsel %vm1943_vm7, %v2538_v29, -inf  ;;  %vm1949_vm9 = vcmp.lt.s32.totalorder %v3880_v60, %v3963_v36  ;;  %v4039_v32 = vrot.slane %v3807_v25, %v1901_v58 }
 0x1a0   : > { %v4023_v8 = vadd.f32 %v2456_v49, %v3935_v41  ;;  %v2027_v54 = vmax.f32 %v1991_v12, %v2032_v45  ;;  %vm1907_vm6 = vcmp.lt.s32.totalorder %v3887_v15, %v3963_v36 }
 0x1a1   : > { %v1462_v17 = vpop.f32.mrb[28].mxu0  ;;  %vm1905_vm2 = vcmp.lt.s32.totalorder %v3035_v24, %v4039_v32  ;;  %vm1914_vm3 = vcmp.lt.s32.totalorder %v3897_v28, %v4039_v32  ;;  %vm1908_vm4 = vcmp.lt.s32.totalorder %v3887_v15, %v4039_v32 }
 0x1a2   : > { %v2457_v10 = vpop.f32.mrb[76].mxu1  ;;  %v2539_v61 = vadd.f32 %v3868_v9, %v1462_v17  ;;  %v1464_v31 = vpop.f32.mrb[29].mxu0 }
 0x1a3   : > { %v2458_v6 = vpop.f32.mrb[77].mxu1  ;;  %v2540_v35 = vadd.f32 %v3873_v16, %v1464_v31  ;;  %v1466_v14 = vpop.f32.mrb[30].mxu0 }
 0x1a4   : > { %v2459_v52 = vadd.f32 %v2458_v6, %v2457_v10  ;;  %v2460_v40 = vpop.f32.mrb[78].mxu1  ;;  %v1993_v41 = vsel %vm1945_vm10, %v2539_v61, -inf  ;;  %v2541_v34 = vadd.f32 %v3875_v38, %v1466_v14  ;;  %v1468_v23 = vpop.f32.mrb[31].mxu0  ;;  %vm1903_vm10 = vcmp.lt.s32.totalorder %v3035_v24, %v3817_v2 }
 0x1a5   : > { %v2461_v9 = vpop.f32.mrb[79].mxu1  ;;  %v4041_v16 = vmax.f32 %v2006_v27, %v1993_v41  ;;  %v1994_v51 = vsel %vm1946_vm8, %v2540_v35, -inf  ;;  %v2542_v0 = vadd.f32 %v3882_v56, %v1468_v23 }
 0x1a6   : > { %v2462_v19 = vadd.f32 %v2461_v9, %v2460_v40  ;;  %v4044_v62 = vmax.f32 %v2027_v54, %v1994_v51  ;;  %v4049_v38 = vsel %vm1948_vm11, %v2541_v34, -inf  ;;  %v4052_v11 = vadd.f32 %v2459_v52, %v3937_v30  ;;  %v4271_v34 = vld [vmem:[#allocation7_spill] sm:$0xff] }
 0x1a7   : > { %v2010_v25 = vmax.f32 %v4041_v16, %v4049_v38  ;;  %v4056_v57 = vsel %vm1949_vm9, %v2542_v0, -inf  ;;  %vm1911_vm11 = vcmp.lt.s32.totalorder %v3894_v18, %v4039_v32  ;;  %vm1923_vm7 = vcmp.lt.s32.totalorder %v4271_v34, %v4039_v32 }
 0x1a8   : > { %v4061_v56 = vadd.f32 %v2462_v19, %v3939_v53  ;;  %v2031_v3 = vmax.f32 %v4044_v62, %v4056_v57  ;;  %vm1913_vm9 = vcmp.lt.s32.totalorder %v3897_v28, %v3963_v36  ;;  %v4273_v19 = vld [vmem:[#allocation6_spill] sm:$0xff] }
 0x1a9   : > { %v1505_v29 = vpop.f32.mrb[0].mxu0 }
 0x1aa   : > { %v2497_v49 = vpop.f32.mrb[80].mxu1  ;;  %v4067_v30 = vsel %vm1903_vm10, %v1505_v29, -inf  ;;  %v1507_v7 = vpop.f32.mrb[1].mxu0  ;;  %vm1920_vm10 = vcmp.lt.s32.totalorder %v4273_v19, %v4039_v32 }
 0x1ab   : > { %v1821_v45 = vadd.f32 %v2497_v49, %v3947_v20  ;;  %v1812_v27 = vpop.f32.mrb[81].mxu1  ;;  %v1509_v12 = vpop.f32.mrb[2].mxu0  ;;  %v1952_v29 = vsel %vm1904_vm5, %v1507_v7, -inf  ;;  %vm1941_vm5 = vcmp.lt.s32.totalorder %v3853_v13, %v4039_v32 }
 0x1ac   : > { %v1813_v53 = vadd.f32 %v1812_v27, %v3942_v44  ;;  %v2498_v54 = vpop.f32.mrb[82].mxu1  ;;  %v4078_v10 = vsel %vm1906_vm12, %v1509_v12, -inf  ;;  %v1511_v61 = vpop.f32.mrb[3].mxu0  ;;  %vm1910_vm12 = vcmp.lt.s32.totalorder %v3894_v18, %v3963_v36 }
 0x1ad   : > { %v1959_v17 = vsel %vm1911_vm11, %v1821_v45, -inf  ;;  %v1824_v20 = vadd.f32 %v2498_v54, %v3949_v42  ;;  %v1815_v31 = vpop.f32.mrb[83].mxu1  ;;  %v1955_v18 = vsel %vm1907_vm6, %v1511_v61, -inf  ;;  %vm1929_vm11 = vcmp.lt.s32.totalorder %v3812_v46, %v4039_v32 }
 0x1ae   : > { %v1953_v6 = vsel %vm1905_vm2, %v1813_v53, -inf  ;;  %v1816_v44 = vadd.f32 %v1815_v31, %v3944_v47  ;;  %v4272_v47 = vld [vmem:[#allocation5_spill] sm:$0xff]  ;;  %vm1919_vm2 = vcmp.lt.s32.totalorder %v4273_v19, %v3963_v36  ;;  %vm1947_vm6 = vcmp.lt.s32.totalorder %v3871_v33, %v4039_v32 }
 0x1af   : > { %v2041_v35 = vmax.f32 %v1953_v6, %v1959_v17  ;;  %v1962_v52 = vsel %vm1914_vm3, %v1824_v20, -inf  ;;  %vm1917_vm8 = vcmp.lt.s32.totalorder %v4272_v47, %v4039_v32  ;;  %v4274_v6 = vld [vmem:[#allocation8_spill] sm:$0xff]  ;;  %vm1935_vm3 = vcmp.lt.s32.totalorder %v3835_v21, %v4039_v32 }
 0x1b0   : > { %v1956_v14 = vsel %vm1908_vm4, %v1816_v44, -inf  ;;  %vm1922_vm4 = vcmp.lt.s32.totalorder %v4271_v34, %v3963_v36 }
 0x1b1   : > { %v2042_v40 = vmax.f32 %v1956_v14, %v1962_v52  ;;  %v1515_v42 = vpop.f32.mrb[4].mxu0 }
 0x1b2   : > { %v2501_v41 = vpop.f32.mrb[84].mxu1  ;;  %v1957_v23 = vsel %vm1909_vm13, %v1515_v42, -inf  ;;  %v1517_v51 = vpop.f32.mrb[5].mxu0  ;;  %vm1926_vm13 = vcmp.lt.s32.totalorder %v4274_v6, %v4039_v32 }
 0x1b3   : > { %v1837_v9 = vadd.f32 %v2501_v41, %v3956_v63  ;;  %v1828_v0 = vpop.f32.mrb[85].mxu1  ;;  %v1999_v49 = vmax.f32 %v4067_v30, %v1957_v23  ;;  %v1958_v45 = vsel %vm1910_vm12, %v1517_v51, -inf  ;;  %v1519_v53 = vpop.f32.mrb[6].mxu0  ;;  %vm1925_vm12 = vcmp.lt.s32.totalorder %v4274_v6, %v3963_v36 }
 0x1b4   : > { %v1829_v27 = vadd.f32 %v1828_v0, %v3951_v48  ;;  %v2502_v12 = vpop.f32.mrb[86].mxu1  ;;  %v2020_v63 = vmax.f32 %v1952_v29, %v1958_v45  ;;  %v1960_v54 = vsel %vm1912_vm14, %v1519_v53, -inf  ;;  %v1521_v20 = vpop.f32.mrb[7].mxu0  ;;  %vm1916_vm14 = vcmp.lt.s32.totalorder %v4272_v47, %v3963_v36 }
 0x1b5   : > { %v1840_v17 = vadd.f32 %v2502_v12, %v3958_v5  ;;  %v1831_v7 = vpop.f32.mrb[87].mxu1  ;;  %v2000_v48 = vmax.f32 %v4078_v10, %v1960_v54  ;;  %v1961_v15 = vsel %vm1913_vm9, %v1521_v20, -inf  ;;  %v1971_v5 = vsel %vm1923_vm7, %v1837_v9, -inf }
 0x1b6   : > { %v1965_v30 = vsel %vm1917_vm8, %v1829_v27, -inf  ;;  %v1832_v61 = vadd.f32 %v1831_v7, %v3953_v39  ;;  %v2021_v44 = vmax.f32 %v1955_v18, %v1961_v15  ;;  %vm1944_vm7 = vcmp.lt.s32.totalorder %v3862_v50, %v4039_v32 }
 0x1b7   : > { %v2043_v31 = vmax.f32 %v2041_v35, %v1965_v30  ;;  %v1974_v14 = vsel %vm1926_vm13, %v1840_v17, -inf  ;;  %vm1950_vm8 = vcmp.lt.s32.totalorder %v3880_v60, %v4039_v32  ;;  %vm2091_vm9 = vcmask 523264  }
 0x1b8   : > { %v1968_v52 = vsel %vm1920_vm10, %v1832_v61, -inf }
 0x1b9   : > { %v2044_v10 = vmax.f32 %v2042_v40, %v1968_v52  ;;  %v2045_v28 = vmax.f32 %v2043_v31, %v1971_v5  ;;  %v1525_v39 = vpop.f32.mrb[8].mxu0 }
 0x1ba   : > { %v2505_v35 = vpop.f32.mrb[88].mxu1  ;;  %v1963_v42 = vsel %vm1915_vm15, %v1525_v39, -inf  ;;  %v1527_v23 = vpop.f32.mrb[9].mxu0  ;;  %vm1932_vm15 = vcmp.lt.s32.totalorder %v3826_v59, %v4039_v32 }
 0x1bb   : > { %v1853_v41 = vadd.f32 %v2505_v35, %v4000_v55  ;;  %v1844_v9 = vpop.f32.mrb[89].mxu1  ;;  %v2046_v40 = vmax.f32 %v2044_v10, %v1974_v14  ;;  %v2001_v51 = vmax.f32 %v1999_v49, %v1963_v42  ;;  %v1964_v0 = vsel %vm1916_vm14, %v1527_v23, -inf  ;;  %v1529_v45 = vpop.f32.mrb[10].mxu0 }
 0x1bc   : > { %v1845_v29 = vadd.f32 %v1844_v9, %v3977_v26  ;;  %v2506_v27 = vpop.f32.mrb[90].mxu1  ;;  %v2022_v53 = vmax.f32 %v2020_v63, %v1964_v0  ;;  %v1966_v55 = vsel %vm1918_vm0, %v1529_v45, -inf  ;;  %v1531_v12 = vpop.f32.mrb[11].mxu0  ;;  %vm1938_vm0 = vcmp.lt.s32.totalorder %v3844_v43, %v4039_v32 }
 0x1bd   : > { %v1856_v47 = vadd.f32 %v2506_v27, %v4003_v37  ;;  %v1847_v18 = vpop.f32.mrb[91].mxu1  ;;  %v2002_v54 = vmax.f32 %v2000_v48, %v1966_v55  ;;  %v1967_v26 = vsel %vm1919_vm2, %v1531_v12, -inf  ;;  %v1983_v59 = vsel %vm1935_vm3, %v1853_v41, -inf }
 0x1be   : > { %v1977_v49 = vsel %vm1929_vm11, %v1845_v29, -inf  ;;  %v1848_v63 = vadd.f32 %v1847_v18, %v3983_v22  ;;  %v2023_v37 = vmax.f32 %v2021_v44, %v1967_v26  ;;  %v4276_v32 = vsub.s32 0, %v3035_v24 }
 0x1bf   : > { %v2047_v17 = vmax.f32 %v2045_v28, %v1977_v49  ;;  %v1986_v30 = vsel %vm1938_vm0, %v1856_v47, -inf }
 0x1c0   : > { %v1980_v20 = vsel %vm1932_vm15, %v1848_v63, -inf }
 0x1c1   : > { %v2048_v7 = vmax.f32 %v2046_v40, %v1980_v20  ;;  %v2049_v46 = vmax.f32 %v2047_v17, %v1983_v59  ;;  %v1535_v19 = vpop.f32.mrb[12].mxu0 }
 0x1c2   : > { %v2509_v48 = vpop.f32.mrb[92].mxu1  ;;  %v1969_v43 = vsel %vm1921_vm1, %v1535_v19, -inf  ;;  %v1537_v21 = vpop.f32.mrb[13].mxu0  ;;  %vm4275_vm1 = vcmp.lt.s32.totalorder %v4274_v6, %v3817_v2 }
 0x1c3   : > { %v1869_v22 = vadd.f32 %v2509_v48, %v4052_v11  ;;  %v1860_v15 = vpop.f32.mrb[93].mxu1  ;;  %v2050_v61 = vmax.f32 %v2048_v7, %v1986_v30  ;;  %v2003_v31 = vmax.f32 %v2001_v51, %v1969_v43  ;;  %v1970_v44 = vsel %vm1922_vm4, %v1537_v21, -inf  ;;  %v1539_v52 = vpop.f32.mrb[14].mxu0 }
 0x1c4   : > { %v1861_v5 = vadd.f32 %v1860_v15, %v4020_v4  ;;  %v2510_v10 = vpop.f32.mrb[94].mxu1  ;;  %v2024_v28 = vmax.f32 %v2022_v53, %v1970_v44  ;;  %v1972_v11 = vsel %vm4275_vm1, %v1539_v52, -inf  ;;  %v1541_v14 = vpop.f32.mrb[15].mxu0  ;;  %v2891_v48 = vmov 1966171168  }
 0x1c5   : > { %v1872_v34 = vadd.f32 %v2510_v10, %v4061_v56  ;;  %v1863_v39 = vpop.f32.mrb[95].mxu1  ;;  %v2012_v35 = vmax.f32 %v2010_v25, %v2003_v31  ;;  %v2004_v42 = vmax.f32 %v2002_v54, %v1972_v11  ;;  %v1973_v33 = vsel %vm1925_vm12, %v1541_v14, -inf }
 0x1c6   : > { %v1989_v4 = vsel %vm1941_vm5, %v1861_v5, -inf  ;;  %v2033_v2 = vmax.f32 %v2031_v3, %v2024_v28  ;;  %v2025_v41 = vmax.f32 %v2023_v37, %v1973_v33  ;;  %v1995_v16 = vsel %vm1947_vm6, %v1869_v22, -inf }
 0x1c7   : > { %v2051_v56 = vmax.f32 %v2049_v46, %v1989_v4  ;;  %v2013_v38 = vmax.f32 %v2004_v42, %v2012_v35  ;;  %v1864_v25 = vadd.f32 %v1863_v39, %v4023_v8  ;;  %v1998_v62 = vsel %vm1950_vm8, %v1872_v34, -inf  ;;  %v2062_v8 = vld [vmem:[%s4252_s2] sm:$0x7] }
 0x1c8   : > { %v2034_v23 = vmax.f32 %v2025_v41, %v2033_v2  ;;  %v2067_v55 = vrot.slane %v2062_v8, %v4276_v32  ;;  %v2071_v18 = vrot.slane %v2062_v8, %v1897_v1  ;;  %v2075_v7 = vrot.slane %v2062_v8, %v1901_v58 }
 0x1c9   : > { %v2053_v13 = vmax.f32 %v2051_v56, %v1995_v16  ;;  %v1992_v36 = vsel %vm1944_vm7, %v1864_v25, -inf  ;;  %v2014_v6 = vrot.slane %v2013_v38, 4  ;;  %v2101_v43 = vunpack.c.l.s4 %v2891_v48 }
 0x1ca   : > { %v2052_v9 = vmax.f32 %v2050_v61, %v1992_v36  ;;  %v2035_v40 = vrot.slane %v2034_v23, 4  ;;  %v4277_v10 = vlaneseq }
 0x1cb   : > { %v2015_v57 = vmax.f32 %v2013_v38, %v2014_v6  ;;  %v2102_v22 = vunpack.c.0.s8 %v2101_v43 }
 0x1cc   : > { %v2054_v3 = vmax.f32 %v2052_v9, %v1998_v62  ;;  %v2036_v51 = vmax.f32 %v2034_v23, %v2035_v40  ;;  %vm2117_vm10 = vcmp.lt.s32.totalorder %v4277_v10, 192 }
 0x1cd   : > { %v2016_v0 = vrot.slane %v2015_v57, 2  ;;  %v2105_v58 = vsub.s32 %v2102_v22, %v3035_v24 }
 0x1ce   : > { %v2055_v29 = vmax.f32 %v2053_v13, %v2054_v3  ;;  %v2037_v50 = vrot.slane %v2036_v51, 2 }
 0x1cf   : > { %v2017_v45 = vmax.f32 %v2015_v57, %v2016_v0 }
 0x1d0   : > { %v2056_v27 = vrot.slane %v2055_v29, 4  ;;  %v2038_v53 = vmax.f32 %v2036_v51, %v2037_v50 }
 0x1d1   : > { %v2018_v60 = vrot.slane %v2017_v45, 1 }
 0x1d2   : > { %v2057_v47 = vmax.f32 %v2055_v29, %v2056_v27  ;;  %v2039_v12 = vrot.slane %v2038_v53, 1 }
 0x1d3   : > { %v2019_v49 = vmax.f32 %v2017_v45, %v2018_v60 }
 0x1d4   : > { %v2040_v54 = vmax.f32 %v2038_v53, %v2039_v12  ;;  %v2058_v26 = vrot.slane %v2057_v47, 2 }
 0x1d5   : > { %v2079_v63 = vadd.f32 %v2067_v55, %v2019_v49 }
 0x1d6   : > { %v2080_v17 = vadd.f32 %v2071_v18, %v2040_v54  ;;  %v2059_v37 = vmax.f32 %v2057_v47, %v2058_v26 }
 0x1d7   : > { %v2082_v21 = vmax.f32 %v2079_v63, 0.0 }
 0x1d8   : > { %v2083_v59 = vmax.f32 %v2080_v17, 0.0  ;;  %v2060_v20 = vrot.slane %v2059_v37, 1 }
 0x1da   : > { %2087 = vrot.lane.b32.xlu0 %v2083_v59, %s2890_s20  ;;  %v2061_v46 = vmax.f32 %v2059_v37, %v2060_v20 }
 0x1dc   : > { %v2081_v30 = vadd.f32 %v2075_v7, %v2061_v46 }
 0x1de   : > { %v2084_v19 = vmax.f32 %v2081_v30, 0.0 }
 0x1e0   : > { %2089 = vrot.lane.b32.xlu0 %v2084_v19, %s2890_s20 }
 0x24c   : > { %v2088_v1 = vpop.permute.xlu0 %2087 }
 0x252   : > { %v2090_v15 = vpop.permute.xlu0 %2089 }
 0x253   : > { %v2092_v61 = vsel %vm2091_vm9, %v2088_v1, %v2090_v15  ;;  %v2096_v31 = vmax.f32 %v2083_v59, %v2090_v15 }
 0x254   : > { %v2095_v44 = vmax.f32 %v2082_v21, %v2092_v61 }
 0x256   : > { %v2099_v5 = vcombine.low %v2095_v44, %v2096_v31 }
 0x258   : > { %v2106_v52 = vrot.slane %v2099_v5, %v2105_v58 }
 0x25a   : > { %v2113_v28 = vrot.slane %v2106_v52, %v2105_v58 }
 0x25c   : > { %2119 = vst.msk [vmem:[%s191_s29] sm:$0x3] %vm2117_vm10, %v2113_v28 }
 0x25d   : > { %2838 = shalt.err (!%p2835_p3)
}
 0x25e   : > { %s2839_s11 = scalar_lea.hbm %s4208_s6, 32  ;;  %s2843_s14 = scalar_lea.hbm %s4254_s4, 64 }
 0x25f   : > { %p2840_p4 = scmp.ne.s32.totalorder %s4208_s6, %s2839_s11  ;;  %p2844_p9 = scmp.lt.u32.totalorder %s4208_s6, %s4254_s4 }
 0x260   : > { %p2845_p10 = scmp.lt.u32.totalorder %s2843_s14, %s2839_s11  ;;  %p2847_p12 = scmp.lt.u32.totalorder %s2839_s11, %s4208_s6 }
 0x261   : > { %p2841_p7 = pnand %p2840_p4, %p2956_p5 }
 0x262   : > { %p2846_p11 = por %p2845_p10, %p2844_p9 }
 0x263   : > { %p2842_p8 = pneg %p2841_p7 }
 0x264   : > { %p2848_p13 = por %p2847_p12, %p2846_p11 }
 0x266   : > { %p2849_p0 = pnand %p2848_p13, %p2842_p8 }
 0x268   : > { %2852 = shalt.err (!%p2849_p0)
}
 0x269   : > { %2591 = dma.vmem_to_hbm [thread:$0]  (%p2956_p5), %s4210_s28, 32, %s4208_s6, %s2121_s7  }
 0x26a PF: > { %p2597_p1 = scmp.ge.s32.totalorder %s2887_s18, 2  ;;  %s2147_s27 = sand.u32 1, %s2875_s15  }
 0x26b   : > { %s2148_s23 = scalar_lea.sflag [#allocation3], %s2147_s27 }
 0x26c   : > { %p2594_p2 = pnand %p2597_p1, %p2960_p6 }
 0x26e   : > { %2870 = dma.done.wait (!%p2594_p2), %s2148_s23, 32  }
 0x26f   : > { %2872 = vsyncadd (!%p2594_p2), %s2148_s23, 4294967264  ;;  %p14_p3 = scmp.ge.s32.totalorder %s2943_s21, 4   ;;  %s4278_s15 = smov %s2879_s16 }
 0x270   : > { %s4279_s16 = smov %s2883_s17  ;;  %s4280_s17 = smov %s2954_s24 }
 0x271   : > { %s4281_s18 = smov %s2943_s21  ;;  %16 = sbr.rel (!%p14_p3) target bundleno = 3 (0x3), region = 71 }
 0x278   :  { %2153 = vsyncpa [#allocation3], 1 }
 0x279   :  { %2155 = vsyncpa [#allocation3 + $0x1], 1 }

</bundles_post_ra>
